<compile_context>
chip_gen: v6e
topology: v6e:2x2x1
jax: 0.10.0
libtpu: 0.0.40
codegen_flags: <defaults>
</compile_context>

<pallas_src>
import jax
import jax.numpy as jnp
import numpy as np
from jax import lax
from jax.experimental import pallas as pl
from jax.experimental.pallas import tpu as pltpu


def _round_up(x, m):
    return ((x + m - 1) // m) * m


# ---------------------------------------------------------------------------
# Kernel 1: generic tiled matmul + bias (batched x-projection and deferred FC).
# Grid axes are independent -> "parallel" (megacore shardable).
# ---------------------------------------------------------------------------
def _matmul_bias_kernel(x_ref, w_ref, b_ref, o_ref):
    o_ref[...] = (
        jnp.dot(x_ref[...], w_ref[...], preferred_element_type=jnp.float32)
        + b_ref[...]
    ).astype(o_ref.dtype)


def _matmul_bias(x, w, b, *, tm_pref=512, tn_pref=512):
    """out[M, N] = x[M, K] @ w[K, N] + b[1, N], tiled over (M, N).

    Tiles are kept <= (tm_pref, tn_pref), M-tiles are multiples of 8 and
    N-tiles multiples of 128 (lane-dense, unmasked stores); M/N are padded
    when they do not divide and the pad is sliced off afterwards.
    """
    M, K = x.shape
    Kw, N = w.shape
    assert K == Kw

    if M <= tm_pref:
        tm = _round_up(max(M, 1), 8)
        Mp = tm
    else:
        tm = tm_pref
        Mp = _round_up(M, tm)
    if N <= tn_pref:
        tn = _round_up(max(N, 1), 128)
        Np = tn
    else:
        tn = tn_pref
        Np = _round_up(N, tn)

    xp = x if Mp == M else jnp.pad(x, ((0, Mp - M), (0, 0)))
    wp = w if Np == N else jnp.pad(w, ((0, 0), (0, Np - N)))
    bp = b if Np == N else jnp.pad(b, ((0, 0), (0, Np - N)))

    grid = (Mp // tm, Np // tn)
    out = pl.pallas_call(
        _matmul_bias_kernel,
        out_shape=jax.ShapeDtypeStruct((Mp, Np), jnp.float32),
        grid_spec=pltpu.PrefetchScalarGridSpec(
            num_scalar_prefetch=0,
            grid=grid,
            in_specs=[
                pl.BlockSpec((tm, K), lambda i, j: (i, 0)),
                pl.BlockSpec((K, tn), lambda i, j: (0, j)),
                pl.BlockSpec((1, tn), lambda i, j: (0, j)),
            ],
            out_specs=pl.BlockSpec((tm, tn), lambda i, j: (i, j)),
        ),
        compiler_params=pltpu.CompilerParams(
            dimension_semantics=("parallel", "parallel"),
        ),
    )(xp, wp, bp)
    if Mp != M or Np != N:
        out = out[:M, :N]
    return out


# ---------------------------------------------------------------------------
# Kernel 2: the sequential LSTM recurrence, tiled over T with (h, c) carried
# in VMEM scratch across grid steps.  One fused h@Wh[H,4H] dot per step.
# ---------------------------------------------------------------------------
def _lstm_recurrence_kernel(gx_ref, wh_ref, hseq_ref, h_scr, c_scr):
    """gx_ref:   (T_chunk, Bs, 4H)  x@Wx + (b_ih + b_hh), gate order (i,f,g,o)
       wh_ref:   (H, 4H)            recurrent weights (f32 or bf16)
       hseq_ref: (T_chunk, Bs, H)   hidden states for this chunk / batch shard
       h_scr, c_scr: (Bs, H) f32    carry across T-chunks (persistent scratch)
    """
    @pl.when(pl.program_id(1) == 0)     # first T-chunk of this batch shard
    def _():
        h_scr[...] = jnp.zeros_like(h_scr)
        c_scr[...] = jnp.zeros_like(c_scr)

    T_chunk = gx_ref.shape[0]
    H = hseq_ref.shape[2]
    wh = wh_ref[...]                    # loop-invariant, hoisted

    def step(t, _):
        h_prev = h_scr[...]
        c_prev = c_scr[...]
        # Single fused recurrent matmul; slice gates at k*H offsets
        # (free relayout when H % 128 == 0).
        gates = gx_ref[t] + jnp.dot(h_prev.astype(wh.dtype), wh,
                                    preferred_element_type=jnp.float32)
        i_g = jax.nn.sigmoid(gates[:, 0 * H:1 * H])
        f_g = jax.nn.sigmoid(gates[:, 1 * H:2 * H])
        g_g = jnp.tanh(gates[:, 2 * H:3 * H])
        o_g = jax.nn.sigmoid(gates[:, 3 * H:4 * H])
        c_new = f_g * c_prev + i_g * g_g
        h_new = o_g * jnp.tanh(c_new)
        hseq_ref[t] = h_new
        h_scr[...] = h_new
        c_scr[...] = c_new
        return 0

    # Partial unroll only over the small chunk (<= 8 steps).
    lax.fori_loop(0, T_chunk, step, 0, unroll=True)


def _phase2_vmem_bytes(T_chunk, Bs, H, w_itemsize=4):
    return (2 * T_chunk * Bs * 4 * H * 4      # gx blocks (double-buffered)
            + 2 * T_chunk * Bs * H * 4        # hseq blocks
            + 2 * H * 4 * H * w_itemsize      # Wh (resident; 2x to be safe)
            + 2 * Bs * H * 4)                 # (h, c) scratch


def _lstm_recurrence(gx, wh, *, B_pad, H, T_chunk, n_shards):
    T_pad = gx.shape[0]
    Bs = B_pad // n_shards
    n_tc = T_pad // T_chunk

    est = _phase2_vmem_bytes(T_chunk, Bs, H, wh.dtype.itemsize) + (4 << 20)
    vmem_limit = int(min(64 << 20, max(32 << 20, est)))   # cap at v7x physical

    return pl.pallas_call(
        _lstm_recurrence_kernel,
        out_shape=jax.ShapeDtypeStruct((T_pad, B_pad, H), jnp.float32),
        grid_spec=pltpu.PrefetchScalarGridSpec(
            num_scalar_prefetch=0,
            grid=(n_shards, n_tc),
            in_specs=[
                pl.BlockSpec((T_chunk, Bs, 4 * H), lambda s, t: (t, s, 0)),
                pl.BlockSpec((H, 4 * H), lambda s, t: (0, 0)),   # resident
            ],
            out_specs=pl.BlockSpec((T_chunk, Bs, H), lambda s, t: (t, s, 0)),
            scratch_shapes=[
                pltpu.VMEM((Bs, H), jnp.float32),   # h carry
                pltpu.VMEM((Bs, H), jnp.float32),   # c carry
            ],
        ),
        compiler_params=pltpu.CompilerParams(
            dimension_semantics=("parallel", "arbitrary"),
            vmem_limit_bytes=vmem_limit,
        ),
    )(gx, wh)


# ---------------------------------------------------------------------------
# Wrapper: DecoderRNN.forward
# ---------------------------------------------------------------------------
def decoder_rnn_forward(features, captions, params, *,
                        mxu_dtype=jnp.float32, core_batch_shards=1):
    """features: [B, E] f32; captions: [B, Tcap] int32 -> logits [B, Tcap, V].

    mxu_dtype: dtype of MXU matmul operands (use jnp.bfloat16 on v6e/v7x for
               ~2-3x MXU throughput; accumulation/elementwise stay f32).
    core_batch_shards: set to 2 on v7x to shard the recurrence over both
               TensorCores (only used if the padded batch splits cleanly).
    """
    embed_tbl = params["embed"]          # [V, E]
    wx = params["wx"]                    # [E, 4H]
    wh = params["wh"]                    # [H, 4H]
    b = params["b"]                      # [1, 4H]  (b_ih + b_hh folded)
    wfc = params["wfc"]                  # [H, V]
    bfc = params["bfc"]                  # [1, V]

    B, E = features.shape
    H = wh.shape[0]
    V = wfc.shape[1]

    # --- glue (XLA): embedding gather, concat, padding, layout prep ---------
    cap_emb = jnp.take(embed_tbl, captions[:, :-1], axis=0)        # [B, Tcap-1, E]
    inputs = jnp.concatenate([features[:, None, :], cap_emb], 1)   # [B, T, E]
    T = inputs.shape[1]

    B_pad = _round_up(B, 8)                                        # f32 sublane size
    n_shards = core_batch_shards
    if n_shards < 1 or B_pad % n_shards or (B_pad // n_shards) % 8:
        n_shards = 1

    # Pick the largest T chunk (<= 8) whose phase-2 block footprint fits ~24 MiB.
    T_chunk = min(T, 8)
    while T_chunk > 1 and _phase2_vmem_bytes(T_chunk, B_pad // n_shards, H) > (24 << 20):
        T_chunk = max(1, T_chunk // 2)
    T_pad = _round_up(T, T_chunk)

    inputs_p = jnp.pad(inputs, ((0, B_pad - B), (0, T_pad - T), (0, 0)))
    x_flat = jnp.transpose(inputs_p, (1, 0, 2)).reshape(T_pad * B_pad, E)  # time-major

    # --- phase 1: batched input projection (one big MXU matmul, bias folded) -
    gates_x = _matmul_bias(x_flat.astype(mxu_dtype), wx.astype(mxu_dtype), b)
    gx = gates_x.reshape(T_pad, B_pad, 4 * H)   # free reshape; NO gate-major transpose

    # --- phase 2: sequential recurrence, T-chunked grid with (h,c) scratch ---
    hseq_tm = _lstm_recurrence(gx, wh.astype(mxu_dtype),
                               B_pad=B_pad, H=H, T_chunk=T_chunk,
                               n_shards=n_shards)                  # [T_pad, Bp, H]

    # --- phase 3: deferred FC over all timesteps (one big MXU matmul) --------
    # Transpose only the SMALL h tensor; drop padded rows/steps; output is
    # written lane-dense in [B*T, V] and reshaped (contiguously) to [B, T, V].
    h_bf = jnp.transpose(hseq_tm[:T], (1, 0, 2))[:B].reshape(B * T, H)
    logits = _matmul_bias(h_bf.astype(mxu_dtype), wfc.astype(mxu_dtype), bfc)
    return logits.reshape(B, T, V)


# ---------------------------------------------------------------------------
# Pure-JAX reference (lax.scan LSTM) for correctness check.
# ---------------------------------------------------------------------------
def _reference_forward(features, captions, params):
    embed_tbl, wx, wh, b = params["embed"], params["wx"], params["wh"], params["b"]
    wfc, bfc = params["wfc"], params["bfc"]
    B, E = features.shape
    H = wh.shape[0]

    cap_emb = jnp.take(embed_tbl, captions[:, :-1], axis=0)
    inputs = jnp.concatenate([features[:, None, :], cap_emb], 1)   # [B, T, E]
    x_tm = jnp.transpose(inputs, (1, 0, 2))                        # [T, B, E]

    def step(carry, x_t):
        h, c = carry
        gates = x_t @ wx + h @ wh + b
        i = jax.nn.sigmoid(gates[:, 0 * H:1 * H])
        f = jax.nn.sigmoid(gates[:, 1 * H:2 * H])
        g = jnp.tanh(gates[:, 2 * H:3 * H])
        o = jax.nn.sigmoid(gates[:, 3 * H:4 * H])
        c_new = f * c + i * g
        h_new = o * jnp.tanh(c_new)
        return (h_new, c_new), h_new

    init = (jnp.zeros((B, H), jnp.float32), jnp.zeros((B, H), jnp.float32))
    _, h_seq = lax.scan(step, init, x_tm)                          # [T, B, H]
    logits = jnp.einsum("tbh,hv->tbv", h_seq, wfc) + bfc
    return jnp.transpose(logits, (1, 0, 2))


def make_params(key, embed_size, hidden_size, vocab_size):
    kE, kWx, kWh, kBi, kBh, kWf, kBf = jax.random.split(key, 7)
    s = 1.0 / np.sqrt(hidden_size)
    return {
        "embed": jax.random.normal(kE, (vocab_size, embed_size), jnp.float32),
        # Stored pre-transposed relative to PyTorch ([4H,E] -> [E,4H], etc.)
        "wx": jax.random.uniform(kWx, (embed_size, 4 * hidden_size), jnp.float32, -s, s),
        "wh": jax.random.uniform(kWh, (hidden_size, 4 * hidden_size), jnp.float32, -s, s),
        "b": (jax.random.uniform(kBi, (1, 4 * hidden_size), jnp.float32, -s, s)
              + jax.random.uniform(kBh, (1, 4 * hidden_size), jnp.float32, -s, s)),
        "wfc": jax.random.uniform(kWf, (hidden_size, vocab_size), jnp.float32, -s, s),
        "bfc": jax.random.uniform(kBf, (1, vocab_size), jnp.float32, -s, s),
    }


if __name__ == "__main__":
    # Small shapes consistent with the module's forward.
    B, E, H, V, Tcap = 2, 32, 32, 128, 8

    key = jax.random.PRNGKey(0)
    k_feat, k_cap, k_par = jax.random.split(key, 3)

    features = jax.random.normal(k_feat, (B, E), jnp.float32)
    captions = jax.random.randint(k_cap, (B, Tcap), 0, V, jnp.int32)
    params = make_params(k_par, E, H, V)

    ref = jax.block_until_ready(_reference_forward(features, captions, params))

    # f32 MXU path: tight check against the pure-JAX reference.
    out = jax.jit(decoder_rnn_forward)(features, captions, params)
    out = jax.block_until_ready(out)
    assert out.shape == (B, Tcap, V), out.shape
    np.testing.assert_allclose(np.asarray(out), np.asarray(ref), rtol=1e-4, atol=1e-4)

    # bf16-operand MXU path (v6e/v7x optimization): loose check.
    out_bf16 = jax.jit(
        lambda f, c, p: decoder_rnn_forward(f, c, p, mxu_dtype=jnp.bfloat16)
    )(features, captions, params)
    out_bf16 = jax.block_until_ready(out_bf16)
    assert out_bf16.shape == (B, Tcap, V), out_bf16.shape
    np.testing.assert_allclose(np.asarray(out_bf16), np.asarray(ref), rtol=5e-2, atol=5e-2)

    # TODO(synk): DecoderRNN.sample (greedy autoregressive decode) not implemented;
    # only the training-time forward pass is kernelized here.
    print("KERNEL_OK")
</pallas_src>

<mosaic_0001>
module attributes {stable_mosaic.version = 11 : i64} {
  func.func @_matmul_bias_kernel(%arg0: i32, %arg1: i32, %arg2: memref<16x32xf32, #tpu.memory_space<vmem>>, %arg3: memref<32x128xf32, #tpu.memory_space<vmem>>, %arg4: memref<1x128xf32, #tpu.memory_space<vmem>>, %arg5: memref<16x128xf32, #tpu.memory_space<vmem>>) attributes {dimension_semantics = [#tpu.dimension_semantics<parallel>, #tpu.dimension_semantics<parallel>], iteration_bounds = array<i64: 1, 1>, scalar_prefetch = 0 : i64, scratch_operands = 0 : i64, tpu.core_type = #tpu.core_type<tc>, window_params = [{transform_indices = @transform_0, window_bounds = array<i64: 16, 32>}, {transform_indices = @transform_1, window_bounds = array<i64: 32, 128>}, {transform_indices = @transform_2, window_bounds = array<i64: 1, 128>}, {transform_indices = @transform_3, window_bounds = array<i64: 16, 128>}]} {
    %c0 = arith.constant 0 : index
    %c0_0 = arith.constant 0 : index
    %0 = vector.load %arg2[%c0, %c0_0] : memref<16x32xf32, #tpu.memory_space<vmem>>, vector<16x32xf32>
    %c0_1 = arith.constant 0 : index
    %c0_2 = arith.constant 0 : index
    %1 = vector.load %arg3[%c0_1, %c0_2] : memref<32x128xf32, #tpu.memory_space<vmem>>, vector<32x128xf32>
    %cst = arith.constant dense<0.000000e+00> : vector<16x128xf32>
    %2 = tpu.matmul %0, %1, %cst {dimension_numbers = #tpu.dot_dimension_numbers<[1], [0], [0], [1], [0, 0, 1, 1], [], []>} : vector<16x32xf32>, vector<32x128xf32>, vector<16x128xf32> -> vector<16x128xf32>
    %c0_3 = arith.constant 0 : index
    %c0_4 = arith.constant 0 : index
    %3 = vector.load %arg4[%c0_3, %c0_4] : memref<1x128xf32, #tpu.memory_space<vmem>>, vector<1x128xf32>
    %4 = vector.broadcast %3 : vector<1x128xf32> to vector<16x128xf32>
    %5 = arith.addf %2, %4 : vector<16x128xf32>
    %c0_5 = arith.constant 0 : index
    %c0_6 = arith.constant 0 : index
    %6 = vector.load %arg5[%c0_5, %c0_6] : memref<16x128xf32, #tpu.memory_space<vmem>>, vector<16x128xf32>
    tpu.vector_store %arg5[%c0_5, %c0_6], %5 {strides = array<i32>} : memref<16x128xf32, #tpu.memory_space<vmem>>, vector<16x128xf32>,
    return
  }
  func.func @transform_0(%arg0: i32, %arg1: i32) -> (i32, i32) {
    %c0_i32 = arith.constant 0 : i32
    %c0_i32_0 = arith.constant 0 : i32
    return %arg0, %c0_i32 : i32, i32
  }
  func.func @transform_1(%arg0: i32, %arg1: i32) -> (i32, i32) {
    %c0_i32 = arith.constant 0 : i32
    %c0_i32_0 = arith.constant 0 : i32
    return %c0_i32, %arg1 : i32, i32
  }
  func.func @transform_2(%arg0: i32, %arg1: i32) -> (i32, i32) {
    %c0_i32 = arith.constant 0 : i32
    %c0_i32_0 = arith.constant 0 : i32
    return %c0_i32, %arg1 : i32, i32
  }
  func.func @transform_3(%arg0: i32, %arg1: i32) -> (i32, i32) {
    %c0_i32 = arith.constant 0 : i32
    return %arg0, %arg1 : i32, i32
  }
}

module attributes {stable_mosaic.version = 11 : i64} {
  func.func @_matmul_bias_kernel(%arg0: i32, %arg1: i32, %arg2: memref<64x32xf32, #tpu.memory_space<vmem>>, %arg3: memref<32x128xf32, #tpu.memory_space<vmem>>, %arg4: memref<1x128xf32, #tpu.memory_space<vmem>>, %arg5: memref<64x128xf32, #tpu.memory_space<vmem>>) attributes {dimension_semantics = [#tpu.dimension_semantics<parallel>, #tpu.dimension_semantics<parallel>], iteration_bounds = array<i64: 1, 1>, scalar_prefetch = 0 : i64, scratch_operands = 0 : i64, tpu.core_type = #tpu.core_type<tc>, window_params = [{transform_indices = @transform_0, window_bounds = array<i64: 64, 32>}, {transform_indices = @transform_1, window_bounds = array<i64: 32, 128>}, {transform_indices = @transform_2, window_bounds = array<i64: 1, 128>}, {transform_indices = @transform_3, window_bounds = array<i64: 64, 128>}]} {
    %c0 = arith.constant 0 : index
    %c0_0 = arith.constant 0 : index
    %0 = vector.load %arg2[%c0, %c0_0] : memref<64x32xf32, #tpu.memory_space<vmem>>, vector<64x32xf32>
    %c0_1 = arith.constant 0 : index
    %c0_2 = arith.constant 0 : index
    %1 = vector.load %arg3[%c0_1, %c0_2] : memref<32x128xf32, #tpu.memory_space<vmem>>, vector<32x128xf32>
    %cst = arith.constant dense<0.000000e+00> : vector<64x128xf32>
    %2 = tpu.matmul %0, %1, %cst {dimension_numbers = #tpu.dot_dimension_numbers<[1], [0], [0], [1], [0, 0, 1, 1], [], []>} : vector<64x32xf32>, vector<32x128xf32>, vector<64x128xf32> -> vector<64x128xf32>
    %c0_3 = arith.constant 0 : index
    %c0_4 = arith.constant 0 : index
    %3 = vector.load %arg4[%c0_3, %c0_4] : memref<1x128xf32, #tpu.memory_space<vmem>>, vector<1x128xf32>
    %4 = vector.broadcast %3 : vector<1x128xf32> to vector<64x128xf32>
    %5 = arith.addf %2, %4 : vector<64x128xf32>
    %c0_5 = arith.constant 0 : index
    %c0_6 = arith.constant 0 : index
    %6 = vector.load %arg5[%c0_5, %c0_6] : memref<64x128xf32, #tpu.memory_space<vmem>>, vector<64x128xf32>
    tpu.vector_store %arg5[%c0_5, %c0_6], %5 {strides = array<i32>} : memref<64x128xf32, #tpu.memory_space<vmem>>, vector<64x128xf32>,
    return
  }
  func.func @transform_0(%arg0: i32, %arg1: i32) -> (i32, i32) {
    %c0_i32 = arith.constant 0 : i32
    %c0_i32_0 = arith.constant 0 : i32
    return %arg0, %c0_i32 : i32, i32
  }
  func.func @transform_1(%arg0: i32, %arg1: i32) -> (i32, i32) {
    %c0_i32 = arith.constant 0 : i32
    %c0_i32_0 = arith.constant 0 : i32
    return %c0_i32, %arg1 : i32, i32
  }
  func.func @transform_2(%arg0: i32, %arg1: i32) -> (i32, i32) {
    %c0_i32 = arith.constant 0 : i32
    %c0_i32_0 = arith.constant 0 : i32
    return %c0_i32, %arg1 : i32, i32
  }
  func.func @transform_3(%arg0: i32, %arg1: i32) -> (i32, i32) {
    %c0_i32 = arith.constant 0 : i32
    return %arg0, %arg1 : i32, i32
  }
}

module attributes {stable_mosaic.version = 11 : i64} {
  func.func @_lstm_recurrence_kernel(%arg0: i32, %arg1: i32, %arg2: memref<8x8x128xf32, #tpu.memory_space<vmem>>, %arg3: memref<32x128xf32, #tpu.memory_space<vmem>>, %arg4: memref<8x8x32xf32, #tpu.memory_space<vmem>>, %arg5: memref<8x32xf32, #tpu.memory_space<vmem>>, %arg6: memref<8x32xf32, #tpu.memory_space<vmem>>) attributes {dimension_semantics = [#tpu.dimension_semantics<parallel>, #tpu.dimension_semantics<arbitrary>], iteration_bounds = array<i64: 1, 1>, scalar_prefetch = 0 : i64, scratch_operands = 2 : i64, tpu.core_type = #tpu.core_type<tc>, window_params = [{transform_indices = @transform_0, window_bounds = array<i64: 8, 8, 128>}, {pipeline_mode = #tpu.pipeline_mode<synchronous>, transform_indices = @transform_1, window_bounds = array<i64: 32, 128>}, {transform_indices = @transform_2, window_bounds = array<i64: 8, 8, 32>}]} {
    %c0_i32 = arith.constant 0 : i32
    %0 = arith.cmpi eq, %arg1, %c0_i32 : i32
    %1 = arith.extui %0 : i1 to i32
    %c0_i32_0 = arith.constant 0 : i32
    %2 = arith.cmpi ne, %1, %c0_i32_0 : i32
    scf.if %2 {
      %cst_130 = arith.constant 0.000000e+00 : f32
      %308 = vector.broadcast %cst_130 : f32 to vector<8x32xf32>
      %c0_131 = arith.constant 0 : index
      %c0_132 = arith.constant 0 : index
      %309 = vector.load %arg5[%c0_131, %c0_132] : memref<8x32xf32, #tpu.memory_space<vmem>>, vector<8x32xf32>
      tpu.vector_store %arg5[%c0_131, %c0_132], %308 {strides = array<i32>} : memref<8x32xf32, #tpu.memory_space<vmem>>, vector<8x32xf32>,
      %cst_133 = arith.constant 0.000000e+00 : f32
      %310 = vector.broadcast %cst_133 : f32 to vector<8x32xf32>
      %c0_134 = arith.constant 0 : index
      %c0_135 = arith.constant 0 : index
      %311 = vector.load %arg6[%c0_134, %c0_135] : memref<8x32xf32, #tpu.memory_space<vmem>>, vector<8x32xf32>
      tpu.vector_store %arg6[%c0_134, %c0_135], %310 {strides = array<i32>} : memref<8x32xf32, #tpu.memory_space<vmem>>, vector<8x32xf32>,
    } else {
    }
    %c0 = arith.constant 0 : index
    %c0_1 = arith.constant 0 : index
    %3 = vector.load %arg3[%c0, %c0_1] : memref<32x128xf32, #tpu.memory_space<vmem>>, vector<32x128xf32>
    %c0_i32_2 = arith.constant 0 : i32
    %c0_3 = arith.constant 0 : index
    %c0_4 = arith.constant 0 : index
    %4 = vector.load %arg5[%c0_3, %c0_4] : memref<8x32xf32, #tpu.memory_space<vmem>>, vector<8x32xf32>
    %c0_5 = arith.constant 0 : index
    %c0_6 = arith.constant 0 : index
    %5 = vector.load %arg6[%c0_5, %c0_6] : memref<8x32xf32, #tpu.memory_space<vmem>>, vector<8x32xf32>
    %6 = arith.index_cast %c0_i32_2 : i32 to index
    %c0_7 = arith.constant 0 : index
    %c0_8 = arith.constant 0 : index
    %7 = vector.load %arg2[%6, %c0_7, %c0_8] : memref<8x8x128xf32, #tpu.memory_space<vmem>>, vector<1x8x128xf32>
    %8 = vector.shape_cast %7 : vector<1x8x128xf32> to vector<8x128xf32>
    %cst = arith.constant dense<0.000000e+00> : vector<8x128xf32>
    %9 = tpu.matmul %4, %3, %cst {dimension_numbers = #tpu.dot_dimension_numbers<[1], [0], [0], [1], [0, 0, 1, 1], [], []>} : vector<8x32xf32>, vector<32x128xf32>, vector<8x128xf32> -> vector<8x128xf32>
    %10 = arith.addf %8, %9 : vector<8x128xf32>
    %11 = vector.extract_strided_slice %10 {offsets = [0, 0], sizes = [8, 32], strides = [1, 1]} : vector<8x128xf32> to vector<8x32xf32>
    %12 = arith.negf %11 : vector<8x32xf32>
    %13 = math.exp %12 : vector<8x32xf32>
    %cst_9 = arith.constant 1.000000e+00 : f32
    %14 = vector.broadcast %cst_9 : f32 to vector<8x32xf32>
    %15 = arith.addf %14, %13 : vector<8x32xf32>
    %16 = arith.divf %14, %15 : vector<8x32xf32>
    %17 = vector.extract_strided_slice %10 {offsets = [0, 32], sizes = [8, 32], strides = [1, 1]} : vector<8x128xf32> to vector<8x32xf32>
    %18 = arith.negf %17 : vector<8x32xf32>
    %19 = math.exp %18 : vector<8x32xf32>
    %cst_10 = arith.constant 1.000000e+00 : f32
    %20 = vector.broadcast %cst_10 : f32 to vector<8x32xf32>
    %21 = arith.addf %20, %19 : vector<8x32xf32>
    %22 = arith.divf %20, %21 : vector<8x32xf32>
    %23 = vector.extract_strided_slice %10 {offsets = [0, 64], sizes = [8, 32], strides = [1, 1]} : vector<8x128xf32> to vector<8x32xf32>
    %24 = math.tanh %23 : vector<8x32xf32>
    %25 = vector.extract_strided_slice %10 {offsets = [0, 96], sizes = [8, 32], strides = [1, 1]} : vector<8x128xf32> to vector<8x32xf32>
    %26 = arith.negf %25 : vector<8x32xf32>
    %27 = math.exp %26 : vector<8x32xf32>
    %cst_11 = arith.constant 1.000000e+00 : f32
    %28 = vector.broadcast %cst_11 : f32 to vector<8x32xf32>
    %29 = arith.addf %28, %27 : vector<8x32xf32>
    %30 = arith.divf %28, %29 : vector<8x32xf32>
    %31 = arith.mulf %22, %5 : vector<8x32xf32>
    %32 = arith.mulf %16, %24 : vector<8x32xf32>
    %33 = arith.addf %31, %32 : vector<8x32xf32>
    %34 = math.tanh %33 : vector<8x32xf32>
    %35 = arith.mulf %30, %34 : vector<8x32xf32>
    %36 = arith.index_cast %c0_i32_2 : i32 to index
    %c0_12 = arith.constant 0 : index
    %c0_13 = arith.constant 0 : index
    %37 = vector.load %arg4[%36, %c0_12, %c0_13] : memref<8x8x32xf32, #tpu.memory_space<vmem>>, vector<1x8x32xf32>
    %38 = vector.shape_cast %37 : vector<1x8x32xf32> to vector<8x32xf32>
    %39 = vector.shape_cast %35 : vector<8x32xf32> to vector<1x8x32xf32>
    tpu.vector_store %arg4[%36, %c0_12, %c0_13], %39 {strides = array<i32>} : memref<8x8x32xf32, #tpu.memory_space<vmem>>, vector<1x8x32xf32>,
    %c0_14 = arith.constant 0 : index
    %c0_15 = arith.constant 0 : index
    %40 = vector.load %arg5[%c0_14, %c0_15] : memref<8x32xf32, #tpu.memory_space<vmem>>, vector<8x32xf32>
    tpu.vector_store %arg5[%c0_14, %c0_15], %35 {strides = array<i32>} : memref<8x32xf32, #tpu.memory_space<vmem>>, vector<8x32xf32>,
    %c0_16 = arith.constant 0 : index
    %c0_17 = arith.constant 0 : index
    %41 = vector.load %arg6[%c0_16, %c0_17] : memref<8x32xf32, #tpu.memory_space<vmem>>, vector<8x32xf32>
    tpu.vector_store %arg6[%c0_16, %c0_17], %33 {strides = array<i32>} : memref<8x32xf32, #tpu.memory_space<vmem>>, vector<8x32xf32>,
    %c1_i32 = arith.constant 1 : i32
    %c0_18 = arith.constant 0 : index
    %c0_19 = arith.constant 0 : index
    %42 = vector.load %arg5[%c0_18, %c0_19] : memref<8x32xf32, #tpu.memory_space<vmem>>, vector<8x32xf32>
    %c0_20 = arith.constant 0 : index
    %c0_21 = arith.constant 0 : index
    %43 = vector.load %arg6[%c0_20, %c0_21] : memref<8x32xf32, #tpu.memory_space<vmem>>, vector<8x32xf32>
    %44 = arith.index_cast %c1_i32 : i32 to index
    %c0_22 = arith.constant 0 : index
    %c0_23 = arith.constant 0 : index
    %45 = vector.load %arg2[%44, %c0_22, %c0_23] : memref<8x8x128xf32, #tpu.memory_space<vmem>>, vector<1x8x128xf32>
    %46 = vector.shape_cast %45 : vector<1x8x128xf32> to vector<8x128xf32>
    %cst_24 = arith.constant dense<0.000000e+00> : vector<8x128xf32>
    %47 = tpu.matmul %42, %3, %cst_24 {dimension_numbers = #tpu.dot_dimension_numbers<[1], [0], [0], [1], [0, 0, 1, 1], [], []>} : vector<8x32xf32>, vector<32x128xf32>, vector<8x128xf32> -> vector<8x128xf32>
    %48 = arith.addf %46, %47 : vector<8x128xf32>
    %49 = vector.extract_strided_slice %48 {offsets = [0, 0], sizes = [8, 32], strides = [1, 1]} : vector<8x128xf32> to vector<8x32xf32>
    %50 = arith.negf %49 : vector<8x32xf32>
    %51 = math.exp %50 : vector<8x32xf32>
    %cst_25 = arith.constant 1.000000e+00 : f32
    %52 = vector.broadcast %cst_25 : f32 to vector<8x32xf32>
    %53 = arith.addf %52, %51 : vector<8x32xf32>
    %54 = arith.divf %52, %53 : vector<8x32xf32>
    %55 = vector.extract_strided_slice %48 {offsets = [0, 32], sizes = [8, 32], strides = [1, 1]} : vector<8x128xf32> to vector<8x32xf32>
    %56 = arith.negf %55 : vector<8x32xf32>
    %57 = math.exp %56 : vector<8x32xf32>
    %cst_26 = arith.constant 1.000000e+00 : f32
    %58 = vector.broadcast %cst_26 : f32 to vector<8x32xf32>
    %59 = arith.addf %58, %57 : vector<8x32xf32>
    %60 = arith.divf %58, %59 : vector<8x32xf32>
    %61 = vector.extract_strided_slice %48 {offsets = [0, 64], sizes = [8, 32], strides = [1, 1]} : vector<8x128xf32> to vector<8x32xf32>
    %62 = math.tanh %61 : vector<8x32xf32>
    %63 = vector.extract_strided_slice %48 {offsets = [0, 96], sizes = [8, 32], strides = [1, 1]} : vector<8x128xf32> to vector<8x32xf32>
    %64 = arith.negf %63 : vector<8x32xf32>
    %65 = math.exp %64 : vector<8x32xf32>
    %cst_27 = arith.constant 1.000000e+00 : f32
    %66 = vector.broadcast %cst_27 : f32 to vector<8x32xf32>
    %67 = arith.addf %66, %65 : vector<8x32xf32>
    %68 = arith.divf %66, %67 : vector<8x32xf32>
    %69 = arith.mulf %60, %43 : vector<8x32xf32>
    %70 = arith.mulf %54, %62 : vector<8x32xf32>
    %71 = arith.addf %69, %70 : vector<8x32xf32>
    %72 = math.tanh %71 : vector<8x32xf32>
    %73 = arith.mulf %68, %72 : vector<8x32xf32>
    %74 = arith.index_cast %c1_i32 : i32 to index
    %c0_28 = arith.constant 0 : index
    %c0_29 = arith.constant 0 : index
    %75 = vector.load %arg4[%74, %c0_28, %c0_29] : memref<8x8x32xf32, #tpu.memory_space<vmem>>, vector<1x8x32xf32>
    %76 = vector.shape_cast %75 : vector<1x8x32xf32> to vector<8x32xf32>
    %77 = vector.shape_cast %73 : vector<8x32xf32> to vector<1x8x32xf32>
    tpu.vector_store %arg4[%74, %c0_28, %c0_29], %77 {strides = array<i32>} : memref<8x8x32xf32, #tpu.memory_space<vmem>>, vector<1x8x32xf32>,
    %c0_30 = arith.constant 0 : index
    %c0_31 = arith.constant 0 : index
    %78 = vector.load %arg5[%c0_30, %c0_31] : memref<8x32xf32, #tpu.memory_space<vmem>>, vector<8x32xf32>
    tpu.vector_store %arg5[%c0_30, %c0_31], %73 {strides = array<i32>} : memref<8x32xf32, #tpu.memory_space<vmem>>, vector<8x32xf32>,
    %c0_32 = arith.constant 0 : index
    %c0_33 = arith.constant 0 : index
    %79 = vector.load %arg6[%c0_32, %c0_33] : memref<8x32xf32, #tpu.memory_space<vmem>>, vector<8x32xf32>
    tpu.vector_store %arg6[%c0_32, %c0_33], %71 {strides = array<i32>} : memref<8x32xf32, #tpu.memory_space<vmem>>, vector<8x32xf32>,
    %c2_i32 = arith.constant 2 : i32
    %c0_34 = arith.constant 0 : index
    %c0_35 = arith.constant 0 : index
    %80 = vector.load %arg5[%c0_34, %c0_35] : memref<8x32xf32, #tpu.memory_space<vmem>>, vector<8x32xf32>
    %c0_36 = arith.constant 0 : index
    %c0_37 = arith.constant 0 : index
    %81 = vector.load %arg6[%c0_36, %c0_37] : memref<8x32xf32, #tpu.memory_space<vmem>>, vector<8x32xf32>
    %82 = arith.index_cast %c2_i32 : i32 to index
    %c0_38 = arith.constant 0 : index
    %c0_39 = arith.constant 0 : index
    %83 = vector.load %arg2[%82, %c0_38, %c0_39] : memref<8x8x128xf32, #tpu.memory_space<vmem>>, vector<1x8x128xf32>
    %84 = vector.shape_cast %83 : vector<1x8x128xf32> to vector<8x128xf32>
    %cst_40 = arith.constant dense<0.000000e+00> : vector<8x128xf32>
    %85 = tpu.matmul %80, %3, %cst_40 {dimension_numbers = #tpu.dot_dimension_numbers<[1], [0], [0], [1], [0, 0, 1, 1], [], []>} : vector<8x32xf32>, vector<32x128xf32>, vector<8x128xf32> -> vector<8x128xf32>
    %86 = arith.addf %84, %85 : vector<8x128xf32>
    %87 = vector.extract_strided_slice %86 {offsets = [0, 0], sizes = [8, 32], strides = [1, 1]} : vector<8x128xf32> to vector<8x32xf32>
    %88 = arith.negf %87 : vector<8x32xf32>
    %89 = math.exp %88 : vector<8x32xf32>
    %cst_41 = arith.constant 1.000000e+00 : f32
    %90 = vector.broadcast %cst_41 : f32 to vector<8x32xf32>
    %91 = arith.addf %90, %89 : vector<8x32xf32>
    %92 = arith.divf %90, %91 : vector<8x32xf32>
    %93 = vector.extract_strided_slice %86 {offsets = [0, 32], sizes = [8, 32], strides = [1, 1]} : vector<8x128xf32> to vector<8x32xf32>
    %94 = arith.negf %93 : vector<8x32xf32>
    %95 = math.exp %94 : vector<8x32xf32>
    %cst_42 = arith.constant 1.000000e+00 : f32
    %96 = vector.broadcast %cst_42 : f32 to vector<8x32xf32>
    %97 = arith.addf %96, %95 : vector<8x32xf32>
    %98 = arith.divf %96, %97 : vector<8x32xf32>
    %99 = vector.extract_strided_slice %86 {offsets = [0, 64], sizes = [8, 32], strides = [1, 1]} : vector<8x128xf32> to vector<8x32xf32>
    %100 = math.tanh %99 : vector<8x32xf32>
    %101 = vector.extract_strided_slice %86 {offsets = [0, 96], sizes = [8, 32], strides = [1, 1]} : vector<8x128xf32> to vector<8x32xf32>
    %102 = arith.negf %101 : vector<8x32xf32>
    %103 = math.exp %102 : vector<8x32xf32>
    %cst_43 = arith.constant 1.000000e+00 : f32
    %104 = vector.broadcast %cst_43 : f32 to vector<8x32xf32>
    %105 = arith.addf %104, %103 : vector<8x32xf32>
    %106 = arith.divf %104, %105 : vector<8x32xf32>
    %107 = arith.mulf %98, %81 : vector<8x32xf32>
    %108 = arith.mulf %92, %100 : vector<8x32xf32>
    %109 = arith.addf %107, %108 : vector<8x32xf32>
    %110 = math.tanh %109 : vector<8x32xf32>
    %111 = arith.mulf %106, %110 : vector<8x32xf32>
    %112 = arith.index_cast %c2_i32 : i32 to index
    %c0_44 = arith.constant 0 : index
    %c0_45 = arith.constant 0 : index
    %113 = vector.load %arg4[%112, %c0_44, %c0_45] : memref<8x8x32xf32, #tpu.memory_space<vmem>>, vector<1x8x32xf32>
    %114 = vector.shape_cast %113 : vector<1x8x32xf32> to vector<8x32xf32>
    %115 = vector.shape_cast %111 : vector<8x32xf32> to vector<1x8x32xf32>
    tpu.vector_store %arg4[%112, %c0_44, %c0_45], %115 {strides = array<i32>} : memref<8x8x32xf32, #tpu.memory_space<vmem>>, vector<1x8x32xf32>,
    %c0_46 = arith.constant 0 : index
    %c0_47 = arith.constant 0 : index
    %116 = vector.load %arg5[%c0_46, %c0_47] : memref<8x32xf32, #tpu.memory_space<vmem>>, vector<8x32xf32>
    tpu.vector_store %arg5[%c0_46, %c0_47], %111 {strides = array<i32>} : memref<8x32xf32, #tpu.memory_space<vmem>>, vector<8x32xf32>,
    %c0_48 = arith.constant 0 : index
    %c0_49 = arith.constant 0 : index
    %117 = vector.load %arg6[%c0_48, %c0_49] : memref<8x32xf32, #tpu.memory_space<vmem>>, vector<8x32xf32>
    tpu.vector_store %arg6[%c0_48, %c0_49], %109 {strides = array<i32>} : memref<8x32xf32, #tpu.memory_space<vmem>>, vector<8x32xf32>,
    %c3_i32 = arith.constant 3 : i32
    %c0_50 = arith.constant 0 : index
    %c0_51 = arith.constant 0 : index
    %118 = vector.load %arg5[%c0_50, %c0_51] : memref<8x32xf32, #tpu.memory_space<vmem>>, vector<8x32xf32>
    %c0_52 = arith.constant 0 : index
    %c0_53 = arith.constant 0 : index
    %119 = vector.load %arg6[%c0_52, %c0_53] : memref<8x32xf32, #tpu.memory_space<vmem>>, vector<8x32xf32>
    %120 = arith.index_cast %c3_i32 : i32 to index
    %c0_54 = arith.constant 0 : index
    %c0_55 = arith.constant 0 : index
    %121 = vector.load %arg2[%120, %c0_54, %c0_55] : memref<8x8x128xf32, #tpu.memory_space<vmem>>, vector<1x8x128xf32>
    %122 = vector.shape_cast %121 : vector<1x8x128xf32> to vector<8x128xf32>
    %cst_56 = arith.constant dense<0.000000e+00> : vector<8x128xf32>
    %123 = tpu.matmul %118, %3, %cst_56 {dimension_numbers = #tpu.dot_dimension_numbers<[1], [0], [0], [1], [0, 0, 1, 1], [], []>} : vector<8x32xf32>, vector<32x128xf32>, vector<8x128xf32> -> vector<8x128xf32>
    %124 = arith.addf %122, %123 : vector<8x128xf32>
    %125 = vector.extract_strided_slice %124 {offsets = [0, 0], sizes = [8, 32], strides = [1, 1]} : vector<8x128xf32> to vector<8x32xf32>
    %126 = arith.negf %125 : vector<8x32xf32>
    %127 = math.exp %126 : vector<8x32xf32>
    %cst_57 = arith.constant 1.000000e+00 : f32
    %128 = vector.broadcast %cst_57 : f32 to vector<8x32xf32>
    %129 = arith.addf %128, %127 : vector<8x32xf32>
    %130 = arith.divf %128, %129 : vector<8x32xf32>
    %131 = vector.extract_strided_slice %124 {offsets = [0, 32], sizes = [8, 32], strides = [1, 1]} : vector<8x128xf32> to vector<8x32xf32>
    %132 = arith.negf %131 : vector<8x32xf32>
    %133 = math.exp %132 : vector<8x32xf32>
    %cst_58 = arith.constant 1.000000e+00 : f32
    %134 = vector.broadcast %cst_58 : f32 to vector<8x32xf32>
    %135 = arith.addf %134, %133 : vector<8x32xf32>
    %136 = arith.divf %134, %135 : vector<8x32xf32>
    %137 = vector.extract_strided_slice %124 {offsets = [0, 64], sizes = [8, 32], strides = [1, 1]} : vector<8x128xf32> to vector<8x32xf32>
    %138 = math.tanh %137 : vector<8x32xf32>
    %139 = vector.extract_strided_slice %124 {offsets = [0, 96], sizes = [8, 32], strides = [1, 1]} : vector<8x128xf32> to vector<8x32xf32>
    %140 = arith.negf %139 : vector<8x32xf32>
    %141 = math.exp %140 : vector<8x32xf32>
    %cst_59 = arith.constant 1.000000e+00 : f32
    %142 = vector.broadcast %cst_59 : f32 to vector<8x32xf32>
    %143 = arith.addf %142, %141 : vector<8x32xf32>
    %144 = arith.divf %142, %143 : vector<8x32xf32>
    %145 = arith.mulf %136, %119 : vector<8x32xf32>
    %146 = arith.mulf %130, %138 : vector<8x32xf32>
    %147 = arith.addf %145, %146 : vector<8x32xf32>
    %148 = math.tanh %147 : vector<8x32xf32>
    %149 = arith.mulf %144, %148 : vector<8x32xf32>
    %150 = arith.index_cast %c3_i32 : i32 to index
    %c0_60 = arith.constant 0 : index
    %c0_61 = arith.constant 0 : index
    %151 = vector.load %arg4[%150, %c0_60, %c0_61] : memref<8x8x32xf32, #tpu.memory_space<vmem>>, vector<1x8x32xf32>
    %152 = vector.shape_cast %151 : vector<1x8x32xf32> to vector<8x32xf32>
    %153 = vector.shape_cast %149 : vector<8x32xf32> to vector<1x8x32xf32>
    tpu.vector_store %arg4[%150, %c0_60, %c0_61], %153 {strides = array<i32>} : memref<8x8x32xf32, #tpu.memory_space<vmem>>, vector<1x8x32xf32>,
    %c0_62 = arith.constant 0 : index
    %c0_63 = arith.constant 0 : index
    %154 = vector.load %arg5[%c0_62, %c0_63] : memref<8x32xf32, #tpu.memory_space<vmem>>, vector<8x32xf32>
    tpu.vector_store %arg5[%c0_62, %c0_63], %149 {strides = array<i32>} : memref<8x32xf32, #tpu.memory_space<vmem>>, vector<8x32xf32>,
    %c0_64 = arith.constant 0 : index
    %c0_65 = arith.constant 0 : index
    %155 = vector.load %arg6[%c0_64, %c0_65] : memref<8x32xf32, #tpu.memory_space<vmem>>, vector<8x32xf32>
    tpu.vector_store %arg6[%c0_64, %c0_65], %147 {strides = array<i32>} : memref<8x32xf32, #tpu.memory_space<vmem>>, vector<8x32xf32>,
    %c4_i32 = arith.constant 4 : i32
    %c0_66 = arith.constant 0 : index
    %c0_67 = arith.constant 0 : index
    %156 = vector.load %arg5[%c0_66, %c0_67] : memref<8x32xf32, #tpu.memory_space<vmem>>, vector<8x32xf32>
    %c0_68 = arith.constant 0 : index
    %c0_69 = arith.constant 0 : index
    %157 = vector.load %arg6[%c0_68, %c0_69] : memref<8x32xf32, #tpu.memory_space<vmem>>, vector<8x32xf32>
    %158 = arith.index_cast %c4_i32 : i32 to index
    %c0_70 = arith.constant 0 : index
    %c0_71 = arith.constant 0 : index
    %159 = vector.load %arg2[%158, %c0_70, %c0_71] : memref<8x8x128xf32, #tpu.memory_space<vmem>>, vector<1x8x128xf32>
    %160 = vector.shape_cast %159 : vector<1x8x128xf32> to vector<8x128xf32>
    %cst_72 = arith.constant dense<0.000000e+00> : vector<8x128xf32>
    %161 = tpu.matmul %156, %3, %cst_72 {dimension_numbers = #tpu.dot_dimension_numbers<[1], [0], [0], [1], [0, 0, 1, 1], [], []>} : vector<8x32xf32>, vector<32x128xf32>, vector<8x128xf32> -> vector<8x128xf32>
    %162 = arith.addf %160, %161 : vector<8x128xf32>
    %163 = vector.extract_strided_slice %162 {offsets = [0, 0], sizes = [8, 32], strides = [1, 1]} : vector<8x128xf32> to vector<8x32xf32>
    %164 = arith.negf %163 : vector<8x32xf32>
    %165 = math.exp %164 : vector<8x32xf32>
    %cst_73 = arith.constant 1.000000e+00 : f32
    %166 = vector.broadcast %cst_73 : f32 to vector<8x32xf32>
    %167 = arith.addf %166, %165 : vector<8x32xf32>
    %168 = arith.divf %166, %167 : vector<8x32xf32>
    %169 = vector.extract_strided_slice %162 {offsets = [0, 32], sizes = [8, 32], strides = [1, 1]} : vector<8x128xf32> to vector<8x32xf32>
    %170 = arith.negf %169 : vector<8x32xf32>
    %171 = math.exp %170 : vector<8x32xf32>
    %cst_74 = arith.constant 1.000000e+00 : f32
    %172 = vector.broadcast %cst_74 : f32 to vector<8x32xf32>
    %173 = arith.addf %172, %171 : vector<8x32xf32>
    %174 = arith.divf %172, %173 : vector<8x32xf32>
    %175 = vector.extract_strided_slice %162 {offsets = [0, 64], sizes = [8, 32], strides = [1, 1]} : vector<8x128xf32> to vector<8x32xf32>
    %176 = math.tanh %175 : vector<8x32xf32>
    %177 = vector.extract_strided_slice %162 {offsets = [0, 96], sizes = [8, 32], strides = [1, 1]} : vector<8x128xf32> to vector<8x32xf32>
    %178 = arith.negf %177 : vector<8x32xf32>
    %179 = math.exp %178 : vector<8x32xf32>
    %cst_75 = arith.constant 1.000000e+00 : f32
    %180 = vector.broadcast %cst_75 : f32 to vector<8x32xf32>
    %181 = arith.addf %180, %179 : vector<8x32xf32>
    %182 = arith.divf %180, %181 : vector<8x32xf32>
    %183 = arith.mulf %174, %157 : vector<8x32xf32>
    %184 = arith.mulf %168, %176 : vector<8x32xf32>
    %185 = arith.addf %183, %184 : vector<8x32xf32>
    %186 = math.tanh %185 : vector<8x32xf32>
    %187 = arith.mulf %182, %186 : vector<8x32xf32>
    %188 = arith.index_cast %c4_i32 : i32 to index
    %c0_76 = arith.constant 0 : index
    %c0_77 = arith.constant 0 : index
    %189 = vector.load %arg4[%188, %c0_76, %c0_77] : memref<8x8x32xf32, #tpu.memory_space<vmem>>, vector<1x8x32xf32>
    %190 = vector.shape_cast %189 : vector<1x8x32xf32> to vector<8x32xf32>
    %191 = vector.shape_cast %187 : vector<8x32xf32> to vector<1x8x32xf32>
    tpu.vector_store %arg4[%188, %c0_76, %c0_77], %191 {strides = array<i32>} : memref<8x8x32xf32, #tpu.memory_space<vmem>>, vector<1x8x32xf32>,
    %c0_78 = arith.constant 0 : index
    %c0_79 = arith.constant 0 : index
    %192 = vector.load %arg5[%c0_78, %c0_79] : memref<8x32xf32, #tpu.memory_space<vmem>>, vector<8x32xf32>
    tpu.vector_store %arg5[%c0_78, %c0_79], %187 {strides = array<i32>} : memref<8x32xf32, #tpu.memory_space<vmem>>, vector<8x32xf32>,
    %c0_80 = arith.constant 0 : index
    %c0_81 = arith.constant 0 : index
    %193 = vector.load %arg6[%c0_80, %c0_81] : memref<8x32xf32, #tpu.memory_space<vmem>>, vector<8x32xf32>
    tpu.vector_store %arg6[%c0_80, %c0_81], %185 {strides = array<i32>} : memref<8x32xf32, #tpu.memory_space<vmem>>, vector<8x32xf32>,
    %c5_i32 = arith.constant 5 : i32
    %c0_82 = arith.constant 0 : index
    %c0_83 = arith.constant 0 : index
    %194 = vector.load %arg5[%c0_82, %c0_83] : memref<8x32xf32, #tpu.memory_space<vmem>>, vector<8x32xf32>
    %c0_84 = arith.constant 0 : index
    %c0_85 = arith.constant 0 : index
    %195 = vector.load %arg6[%c0_84, %c0_85] : memref<8x32xf32, #tpu.memory_space<vmem>>, vector<8x32xf32>
    %196 = arith.index_cast %c5_i32 : i32 to index
    %c0_86 = arith.constant 0 : index
    %c0_87 = arith.constant 0 : index
    %197 = vector.load %arg2[%196, %c0_86, %c0_87] : memref<8x8x128xf32, #tpu.memory_space<vmem>>, vector<1x8x128xf32>
    %198 = vector.shape_cast %197 : vector<1x8x128xf32> to vector<8x128xf32>
    %cst_88 = arith.constant dense<0.000000e+00> : vector<8x128xf32>
    %199 = tpu.matmul %194, %3, %cst_88 {dimension_numbers = #tpu.dot_dimension_numbers<[1], [0], [0], [1], [0, 0, 1, 1], [], []>} : vector<8x32xf32>, vector<32x128xf32>, vector<8x128xf32> -> vector<8x128xf32>
    %200 = arith.addf %198, %199 : vector<8x128xf32>
    %201 = vector.extract_strided_slice %200 {offsets = [0, 0], sizes = [8, 32], strides = [1, 1]} : vector<8x128xf32> to vector<8x32xf32>
    %202 = arith.negf %201 : vector<8x32xf32>
    %203 = math.exp %202 : vector<8x32xf32>
    %cst_89 = arith.constant 1.000000e+00 : f32
    %204 = vector.broadcast %cst_89 : f32 to vector<8x32xf32>
    %205 = arith.addf %204, %203 : vector<8x32xf32>
    %206 = arith.divf %204, %205 : vector<8x32xf32>
    %207 = vector.extract_strided_slice %200 {offsets = [0, 32], sizes = [8, 32], strides = [1, 1]} : vector<8x128xf32> to vector<8x32xf32>
    %208 = arith.negf %207 : vector<8x32xf32>
    %209 = math.exp %208 : vector<8x32xf32>
    %cst_90 = arith.constant 1.000000e+00 : f32
    %210 = vector.broadcast %cst_90 : f32 to vector<8x32xf32>
    %211 = arith.addf %210, %209 : vector<8x32xf32>
    %212 = arith.divf %210, %211 : vector<8x32xf32>
    %213 = vector.extract_strided_slice %200 {offsets = [0, 64], sizes = [8, 32], strides = [1, 1]} : vector<8x128xf32> to vector<8x32xf32>
    %214 = math.tanh %213 : vector<8x32xf32>
    %215 = vector.extract_strided_slice %200 {offsets = [0, 96], sizes = [8, 32], strides = [1, 1]} : vector<8x128xf32> to vector<8x32xf32>
    %216 = arith.negf %215 : vector<8x32xf32>
    %217 = math.exp %216 : vector<8x32xf32>
    %cst_91 = arith.constant 1.000000e+00 : f32
    %218 = vector.broadcast %cst_91 : f32 to vector<8x32xf32>
    %219 = arith.addf %218, %217 : vector<8x32xf32>
    %220 = arith.divf %218, %219 : vector<8x32xf32>
    %221 = arith.mulf %212, %195 : vector<8x32xf32>
    %222 = arith.mulf %206, %214 : vector<8x32xf32>
    %223 = arith.addf %221, %222 : vector<8x32xf32>
    %224 = math.tanh %223 : vector<8x32xf32>
    %225 = arith.mulf %220, %224 : vector<8x32xf32>
    %226 = arith.index_cast %c5_i32 : i32 to index
    %c0_92 = arith.constant 0 : index
    %c0_93 = arith.constant 0 : index
    %227 = vector.load %arg4[%226, %c0_92, %c0_93] : memref<8x8x32xf32, #tpu.memory_space<vmem>>, vector<1x8x32xf32>
    %228 = vector.shape_cast %227 : vector<1x8x32xf32> to vector<8x32xf32>
    %229 = vector.shape_cast %225 : vector<8x32xf32> to vector<1x8x32xf32>
    tpu.vector_store %arg4[%226, %c0_92, %c0_93], %229 {strides = array<i32>} : memref<8x8x32xf32, #tpu.memory_space<vmem>>, vector<1x8x32xf32>,
    %c0_94 = arith.constant 0 : index
    %c0_95 = arith.constant 0 : index
    %230 = vector.load %arg5[%c0_94, %c0_95] : memref<8x32xf32, #tpu.memory_space<vmem>>, vector<8x32xf32>
    tpu.vector_store %arg5[%c0_94, %c0_95], %225 {strides = array<i32>} : memref<8x32xf32, #tpu.memory_space<vmem>>, vector<8x32xf32>,
    %c0_96 = arith.constant 0 : index
    %c0_97 = arith.constant 0 : index
    %231 = vector.load %arg6[%c0_96, %c0_97] : memref<8x32xf32, #tpu.memory_space<vmem>>, vector<8x32xf32>
    tpu.vector_store %arg6[%c0_96, %c0_97], %223 {strides = array<i32>} : memref<8x32xf32, #tpu.memory_space<vmem>>, vector<8x32xf32>,
    %c6_i32 = arith.constant 6 : i32
    %c0_98 = arith.constant 0 : index
    %c0_99 = arith.constant 0 : index
    %232 = vector.load %arg5[%c0_98, %c0_99] : memref<8x32xf32, #tpu.memory_space<vmem>>, vector<8x32xf32>
    %c0_100 = arith.constant 0 : index
    %c0_101 = arith.constant 0 : index
    %233 = vector.load %arg6[%c0_100, %c0_101] : memref<8x32xf32, #tpu.memory_space<vmem>>, vector<8x32xf32>
    %234 = arith.index_cast %c6_i32 : i32 to index
    %c0_102 = arith.constant 0 : index
    %c0_103 = arith.constant 0 : index
    %235 = vector.load %arg2[%234, %c0_102, %c0_103] : memref<8x8x128xf32, #tpu.memory_space<vmem>>, vector<1x8x128xf32>
    %236 = vector.shape_cast %235 : vector<1x8x128xf32> to vector<8x128xf32>
    %cst_104 = arith.constant dense<0.000000e+00> : vector<8x128xf32>
    %237 = tpu.matmul %232, %3, %cst_104 {dimension_numbers = #tpu.dot_dimension_numbers<[1], [0], [0], [1], [0, 0, 1, 1], [], []>} : vector<8x32xf32>, vector<32x128xf32>, vector<8x128xf32> -> vector<8x128xf32>
    %238 = arith.addf %236, %237 : vector<8x128xf32>
    %239 = vector.extract_strided_slice %238 {offsets = [0, 0], sizes = [8, 32], strides = [1, 1]} : vector<8x128xf32> to vector<8x32xf32>
    %240 = arith.negf %239 : vector<8x32xf32>
    %241 = math.exp %240 : vector<8x32xf32>
    %cst_105 = arith.constant 1.000000e+00 : f32
    %242 = vector.broadcast %cst_105 : f32 to vector<8x32xf32>
    %243 = arith.addf %242, %241 : vector<8x32xf32>
    %244 = arith.divf %242, %243 : vector<8x32xf32>
    %245 = vector.extract_strided_slice %238 {offsets = [0, 32], sizes = [8, 32], strides = [1, 1]} : vector<8x128xf32> to vector<8x32xf32>
    %246 = arith.negf %245 : vector<8x32xf32>
    %247 = math.exp %246 : vector<8x32xf32>
    %cst_106 = arith.constant 1.000000e+00 : f32
    %248 = vector.broadcast %cst_106 : f32 to vector<8x32xf32>
    %249 = arith.addf %248, %247 : vector<8x32xf32>
    %250 = arith.divf %248, %249 : vector<8x32xf32>
    %251 = vector.extract_strided_slice %238 {offsets = [0, 64], sizes = [8, 32], strides = [1, 1]} : vector<8x128xf32> to vector<8x32xf32>
    %252 = math.tanh %251 : vector<8x32xf32>
    %253 = vector.extract_strided_slice %238 {offsets = [0, 96], sizes = [8, 32], strides = [1, 1]} : vector<8x128xf32> to vector<8x32xf32>
    %254 = arith.negf %253 : vector<8x32xf32>
    %255 = math.exp %254 : vector<8x32xf32>
    %cst_107 = arith.constant 1.000000e+00 : f32
    %256 = vector.broadcast %cst_107 : f32 to vector<8x32xf32>
    %257 = arith.addf %256, %255 : vector<8x32xf32>
    %258 = arith.divf %256, %257 : vector<8x32xf32>
    %259 = arith.mulf %250, %233 : vector<8x32xf32>
    %260 = arith.mulf %244, %252 : vector<8x32xf32>
    %261 = arith.addf %259, %260 : vector<8x32xf32>
    %262 = math.tanh %261 : vector<8x32xf32>
    %263 = arith.mulf %258, %262 : vector<8x32xf32>
    %264 = arith.index_cast %c6_i32 : i32 to index
    %c0_108 = arith.constant 0 : index
    %c0_109 = arith.constant 0 : index
    %265 = vector.load %arg4[%264, %c0_108, %c0_109] : memref<8x8x32xf32, #tpu.memory_space<vmem>>, vector<1x8x32xf32>
    %266 = vector.shape_cast %265 : vector<1x8x32xf32> to vector<8x32xf32>
    %267 = vector.shape_cast %263 : vector<8x32xf32> to vector<1x8x32xf32>
    tpu.vector_store %arg4[%264, %c0_108, %c0_109], %267 {strides = array<i32>} : memref<8x8x32xf32, #tpu.memory_space<vmem>>, vector<1x8x32xf32>,
    %c0_110 = arith.constant 0 : index
    %c0_111 = arith.constant 0 : index
    %268 = vector.load %arg5[%c0_110, %c0_111] : memref<8x32xf32, #tpu.memory_space<vmem>>, vector<8x32xf32>
    tpu.vector_store %arg5[%c0_110, %c0_111], %263 {strides = array<i32>} : memref<8x32xf32, #tpu.memory_space<vmem>>, vector<8x32xf32>,
    %c0_112 = arith.constant 0 : index
    %c0_113 = arith.constant 0 : index
    %269 = vector.load %arg6[%c0_112, %c0_113] : memref<8x32xf32, #tpu.memory_space<vmem>>, vector<8x32xf32>
    tpu.vector_store %arg6[%c0_112, %c0_113], %261 {strides = array<i32>} : memref<8x32xf32, #tpu.memory_space<vmem>>, vector<8x32xf32>,
    %c7_i32 = arith.constant 7 : i32
    %c0_114 = arith.constant 0 : index
    %c0_115 = arith.constant 0 : index
    %270 = vector.load %arg5[%c0_114, %c0_115] : memref<8x32xf32, #tpu.memory_space<vmem>>, vector<8x32xf32>
    %c0_116 = arith.constant 0 : index
    %c0_117 = arith.constant 0 : index
    %271 = vector.load %arg6[%c0_116, %c0_117] : memref<8x32xf32, #tpu.memory_space<vmem>>, vector<8x32xf32>
    %272 = arith.index_cast %c7_i32 : i32 to index
    %c0_118 = arith.constant 0 : index
    %c0_119 = arith.constant 0 : index
    %273 = vector.load %arg2[%272, %c0_118, %c0_119] : memref<8x8x128xf32, #tpu.memory_space<vmem>>, vector<1x8x128xf32>
    %274 = vector.shape_cast %273 : vector<1x8x128xf32> to vector<8x128xf32>
    %cst_120 = arith.constant dense<0.000000e+00> : vector<8x128xf32>
    %275 = tpu.matmul %270, %3, %cst_120 {dimension_numbers = #tpu.dot_dimension_numbers<[1], [0], [0], [1], [0, 0, 1, 1], [], []>} : vector<8x32xf32>, vector<32x128xf32>, vector<8x128xf32> -> vector<8x128xf32>
    %276 = arith.addf %274, %275 : vector<8x128xf32>
    %277 = vector.extract_strided_slice %276 {offsets = [0, 0], sizes = [8, 32], strides = [1, 1]} : vector<8x128xf32> to vector<8x32xf32>
    %278 = arith.negf %277 : vector<8x32xf32>
    %279 = math.exp %278 : vector<8x32xf32>
    %cst_121 = arith.constant 1.000000e+00 : f32
    %280 = vector.broadcast %cst_121 : f32 to vector<8x32xf32>
    %281 = arith.addf %280, %279 : vector<8x32xf32>
    %282 = arith.divf %280, %281 : vector<8x32xf32>
    %283 = vector.extract_strided_slice %276 {offsets = [0, 32], sizes = [8, 32], strides = [1, 1]} : vector<8x128xf32> to vector<8x32xf32>
    %284 = arith.negf %283 : vector<8x32xf32>
    %285 = math.exp %284 : vector<8x32xf32>
    %cst_122 = arith.constant 1.000000e+00 : f32
    %286 = vector.broadcast %cst_122 : f32 to vector<8x32xf32>
    %287 = arith.addf %286, %285 : vector<8x32xf32>
    %288 = arith.divf %286, %287 : vector<8x32xf32>
    %289 = vector.extract_strided_slice %276 {offsets = [0, 64], sizes = [8, 32], strides = [1, 1]} : vector<8x128xf32> to vector<8x32xf32>
    %290 = math.tanh %289 : vector<8x32xf32>
    %291 = vector.extract_strided_slice %276 {offsets = [0, 96], sizes = [8, 32], strides = [1, 1]} : vector<8x128xf32> to vector<8x32xf32>
    %292 = arith.negf %291 : vector<8x32xf32>
    %293 = math.exp %292 : vector<8x32xf32>
    %cst_123 = arith.constant 1.000000e+00 : f32
    %294 = vector.broadcast %cst_123 : f32 to vector<8x32xf32>
    %295 = arith.addf %294, %293 : vector<8x32xf32>
    %296 = arith.divf %294, %295 : vector<8x32xf32>
    %297 = arith.mulf %288, %271 : vector<8x32xf32>
    %298 = arith.mulf %282, %290 : vector<8x32xf32>
    %299 = arith.addf %297, %298 : vector<8x32xf32>
    %300 = math.tanh %299 : vector<8x32xf32>
    %301 = arith.mulf %296, %300 : vector<8x32xf32>
    %302 = arith.index_cast %c7_i32 : i32 to index
    %c0_124 = arith.constant 0 : index
    %c0_125 = arith.constant 0 : index
    %303 = vector.load %arg4[%302, %c0_124, %c0_125] : memref<8x8x32xf32, #tpu.memory_space<vmem>>, vector<1x8x32xf32>
    %304 = vector.shape_cast %303 : vector<1x8x32xf32> to vector<8x32xf32>
    %305 = vector.shape_cast %301 : vector<8x32xf32> to vector<1x8x32xf32>
    tpu.vector_store %arg4[%302, %c0_124, %c0_125], %305 {strides = array<i32>} : memref<8x8x32xf32, #tpu.memory_space<vmem>>, vector<1x8x32xf32>,
    %c0_126 = arith.constant 0 : index
    %c0_127 = arith.constant 0 : index
    %306 = vector.load %arg5[%c0_126, %c0_127] : memref<8x32xf32, #tpu.memory_space<vmem>>, vector<8x32xf32>
    tpu.vector_store %arg5[%c0_126, %c0_127], %301 {strides = array<i32>} : memref<8x32xf32, #tpu.memory_space<vmem>>, vector<8x32xf32>,
    %c0_128 = arith.constant 0 : index
    %c0_129 = arith.constant 0 : index
    %307 = vector.load %arg6[%c0_128, %c0_129] : memref<8x32xf32, #tpu.memory_space<vmem>>, vector<8x32xf32>
    tpu.vector_store %arg6[%c0_128, %c0_129], %299 {strides = array<i32>} : memref<8x32xf32, #tpu.memory_space<vmem>>, vector<8x32xf32>,
    %c8_i32 = arith.constant 8 : i32
    return
  }
  func.func @transform_0(%arg0: i32, %arg1: i32) -> (i32, i32, i32) {
    %c0_i32 = arith.constant 0 : i32
    %c0_i32_0 = arith.constant 0 : i32
    return %arg1, %arg0, %c0_i32 : i32, i32, i32
  }
  func.func @transform_1(%arg0: i32, %arg1: i32) -> (i32, i32) {
    %c0_i32 = arith.constant 0 : i32
    %c0_i32_0 = arith.constant 0 : i32
    %c0_i32_1 = arith.constant 0 : i32
    return %c0_i32, %c0_i32_0 : i32, i32
  }
  func.func @transform_2(%arg0: i32, %arg1: i32) -> (i32, i32, i32) {
    %c0_i32 = arith.constant 0 : i32
    %c0_i32_0 = arith.constant 0 : i32
    return %arg1, %arg0, %c0_i32 : i32, i32, i32
  }
}

</mosaic_0001>

<bundles_post_ra>
// kernel: decoder_rnn_forward.3
= control target key start
LH: loop header
LB: loop body
LE: loop exit
PB: predicated region body
PF: predicated region fallthrough
CT: control target
= control target key end

     0   :  { %vm33_vm0 = vcmask 261120   ;;  %s315_s1 = inlined_call_operand.vmem [shape: f32[32,128], index: 1, kind: input, shape index: {}]   ;;  %s316_s0 = inlined_call_operand.vmem [shape: f32[64,32], index: 0, kind: input, shape index: {}]   ;;  %s317_s2 = inlined_call_operand.vmem [shape: f32[1,128], index: 2, kind: input, shape index: {}]   ;;  %s318_s3 = inlined_call_operand.vmem [shape: f32[64,128], index: 3, kind: output, shape index: {}]  }
   0x1   :  { %v25_v0 = vld [vmem:[%s315_s1 + $0x18] sm:$0xff]  ;;  %v24_v1 = vld [vmem:[%s315_s1 + $0x10] sm:$0xff]  ;;  %v23_v2 = vld [vmem:[%s315_s1 + $0x8] sm:$0xff] }
   0x2   :  { %196 = vmatprep.subr.mxu0 %v25_v0  ;;  %216 = vmatprep.subr.mxu1 %v25_v0  ;;  %v22_v3 = vld [vmem:[%s315_s1] sm:$0xff]  ;;  %v15_v6 = vld [vmem:[%s316_s0 + $0x8] sm:$0xff]  ;;  %v16_v8 = vld [vmem:[%s316_s0 + $0x10] sm:$0xff] }
   0x3   :  { %197 = vmatpush3.msra.mxu0 %v25_v0  ;;  %220 = vmatpush3.msra.mxu1 %v25_v0  ;;  %v14_v4 = vld [vmem:[%s316_s0] sm:$0xff]  ;;  %v19_v7 = vld [vmem:[%s316_s0 + $0x28] sm:$0xff]  ;;  %v20_v9 = vld [vmem:[%s316_s0 + $0x30] sm:$0xff] }
   0x4   :  { %198 = vmatprep.subr.mxu0 %v24_v1  ;;  %217 = vmatprep.subr.mxu1 %v24_v1  ;;  %v18_v5 = vld [vmem:[%s316_s0 + $0x20] sm:$0xff]  ;;  %v17_v10 = vld [vmem:[%s316_s0 + $0x18] sm:$0xff] }
   0x5   :  { %199 = vmatpush3.msra.mxu0 %v24_v1  ;;  %221 = vmatpush3.msra.mxu1 %v24_v1  ;;  %v21_v11 = vld [vmem:[%s316_s0 + $0x38] sm:$0xff]  ;;  %v175_v12 = vld [vmem:[%s317_s2] ss:$0 sm:$0xff] }
   0x6   :  { %200 = vmatprep.subr.mxu0 %v23_v2  ;;  %218 = vmatprep.subr.mxu1 %v23_v2 }
   0x7   :  { %201 = vmatpush3.msra.mxu0 %v23_v2  ;;  %222 = vmatpush3.msra.mxu1 %v23_v2 }
   0x8   :  { %202 = vmatprep.subr.mxu0 %v22_v3  ;;  %219 = vmatprep.subr.mxu1 %v22_v3 }
   0x9   :  { %203 = vmatpush3.msra.mxu0 %v22_v3  ;;  %223 = vmatpush3.msra.mxu1 %v22_v3 }
   0xa   :  { %204 = vmatprep.mubr.msk.f32.mxu0 %vm33_vm0, %v14_v4  ;;  %210 = vmatprep.mubr.msk.f32.mxu1 %vm33_vm0, %v18_v5 }
   0xb   :  { %205 = vmatmul.mubr.msk.f32.vlgmr.msra.gmra.mxu0 %vm33_vm0, %v15_v6  ;;  %211 = vmatmul.mubr.msk.f32.vlgmr.msra.gmra.mxu1 %vm33_vm0, %v19_v7 }
   0xc   :  { %207 = vmatprep.mubr.msk.f32.mxu0 %vm33_vm0, %v16_v8  ;;  %213 = vmatprep.mubr.msk.f32.mxu1 %vm33_vm0, %v20_v9 }
   0xf   :  { %208 = vmatmul.mubr.msk.f32.gmra.mxu0 %vm33_vm0, %v17_v10  ;;  %214 = vmatmul.mubr.msk.f32.gmra.mxu1 %vm33_vm0, %v21_v11 }
  0xcb   :  { %v206_v13 = vpop.f32.mrf.mxu0  ;;  %v212_v14 = vpop.f32.mrf.mxu1 }
  0xcc   :  { %v130_v15 = vadd.f32 %v206_v13, %v175_v12  ;;  %v150_v16 = vadd.f32 %v212_v14, %v175_v12 }
  0xcd   :  { %v124_v17 = vpop.f32.mrf.mxu0  ;;  %v144_v18 = vpop.f32.mrf.mxu1 }
  0xce   :  { %164 = vst [vmem:[%s318_s3 + $0x8] sm:$0xff] %v130_v15  ;;  %168 = vst [vmem:[%s318_s3 + $0x28] sm:$0xff] %v150_v16  ;;  %v125_v19 = vadd.f32 %v175_v12, %v124_v17  ;;  %v145_v20 = vadd.f32 %v175_v12, %v144_v18 }
  0xcf   :  { %v209_v21 = vpop.f32.mrf.mxu0  ;;  %v215_v22 = vpop.f32.mrf.mxu1 }
  0xd0   :  { %163 = vst [vmem:[%s318_s3] sm:$0xff] %v125_v19  ;;  %167 = vst [vmem:[%s318_s3 + $0x20] sm:$0xff] %v145_v20  ;;  %v140_v23 = vadd.f32 %v209_v21, %v175_v12  ;;  %v160_v24 = vadd.f32 %v215_v22, %v175_v12 }
  0xd1   :  { %v134_v25 = vpop.f32.mrf.mxu0  ;;  %v154_v26 = vpop.f32.mrf.mxu1 }
  0xd2   :  { %166 = vst [vmem:[%s318_s3 + $0x18] sm:$0xff] %v140_v23  ;;  %170 = vst [vmem:[%s318_s3 + $0x38] sm:$0xff] %v160_v24  ;;  %v135_v27 = vadd.f32 %v175_v12, %v134_v25  ;;  %v155_v28 = vadd.f32 %v175_v12, %v154_v26 }
  0xd4   :  { %165 = vst [vmem:[%s318_s3 + $0x10] sm:$0xff] %v135_v27  ;;  %169 = vst [vmem:[%s318_s3 + $0x30] sm:$0xff] %v155_v28 }

// kernel: decoder_rnn_forward.5
= control target key start
LH: loop header
LB: loop body
LE: loop exit
PB: predicated region body
PF: predicated region fallthrough
CT: control target
= control target key end

     0   :  { %vm28_vm0 = vcmask 261120   ;;  %s220_s0 = inlined_call_operand.vmem [shape: f32[16,32], index: 0, kind: input, shape index: {}]   ;;  %s221_s1 = inlined_call_operand.vmem [shape: f32[32,128], index: 1, kind: input, shape index: {}]   ;;  %s222_s2 = inlined_call_operand.vmem [shape: f32[1,128], index: 2, kind: input, shape index: {}]   ;;  %s223_s3 = inlined_call_operand.hbm [shape: f32[16,128], index: 3, kind: output, shape index: {}]  }
   0x1   :  { %v20_v0 = vld [vmem:[%s221_s1 + $0x18] sm:$0xff]  ;;  %v19_v1 = vld [vmem:[%s221_s1 + $0x10] sm:$0xff]  ;;  %v15_v2 = vld [vmem:[%s220_s0] sm:$0xff] }
   0x2   :  { %137 = vmatprep.subr.mxu0 %v20_v0  ;;  %v18_v3 = vld [vmem:[%s221_s1 + $0x8] sm:$0xff]  ;;  %145 = vmatprep.mubr.msk.f32.mxu0 %vm28_vm0, %v15_v2 }
   0x3   :  { %138 = vmatpush3.msra.mxu0 %v20_v0 }
   0x4   :  { %8 = vsyncpa [#allocation3], 0  ;;  %139 = vmatprep.subr.mxu0 %v19_v1  ;;  %v17_v4 = vld [vmem:[%s221_s1] sm:$0xff]  ;;  %v16_v5 = vld [vmem:[%s220_s0 + $0x8] sm:$0xff]  ;;  %s173_s26 = smov [#allocation2]  }
   0x5   :  { %140 = vmatpush3.msra.mxu0 %v19_v1  ;;  %v128_v6 = vld [vmem:[%s222_s2] ss:$0 sm:$0xff]  ;;  %s117_s27 = sshll.u32 %s173_s26, 4  ;;  %s118_s27 = int_to_ptr.vmem [resolvable:$true] %s117_s27 }
   0x6   :  { %141 = vmatprep.subr.mxu0 %v18_v3  ;;  %s151_s1 = scalar_lea.vmem %s118_s27, 256  ;;  %p156_p1 = scmp.lt.s32.totalorder %s118_s27, %s118_s27 }
   0x7   :  { %142 = vmatpush3.msra.mxu0 %v18_v3  ;;  %p152_p0 = scmp.ne.s32.totalorder %s118_s27, %s151_s1  ;;  %p157_p2 = scmp.lt.s32.totalorder %s151_s1, %s151_s1 }
   0x8   :  { %143 = vmatprep.subr.mxu0 %v17_v4 }
   0x9   :  { %144 = vmatpush3.msra.mxu0 %v17_v4  ;;  %p158_p3 = por %p157_p2, %p156_p1 }
   0xa   :  { %146 = vmatmul.mubr.msk.f32.vlgmr.msra.gmra.mxu0 %vm28_vm0, %v16_v5 }
   0xb   :  { %p159_p4 = pnand %p158_p3, %p152_p0 }
  0xca   :  { %v147_v7 = vpop.f32.mrf.mxu0 }
  0xcb   :  { %v107_v8 = vadd.f32 %v147_v7, %v128_v6 }
  0xcc   :  { %v101_v9 = vpop.f32.mrf.mxu0 }
  0xcd   :  { %111 = vst [vmem:[#allocation2 + $0x8] sm:$0xff] %v107_v8  ;;  %v102_v10 = vadd.f32 %v128_v6, %v101_v9 }
  0xcf   :  { %110 = vst [vmem:[#allocation2] sm:$0xff] %v102_v10 }
  0xd0   :  { %162 = shalt.err (!%p159_p4)
}
  0xd1   :  { %s174_s0 = smov 128   ;;  %s175_s28 = smov 8  }
  0xd2   :  { %123 = dma.vmem_to_hbm [thread:$0]  %s118_s27, 256, %s223_s3, [#allocation3], %s174_s0, %s174_s0, %s175_s28  }
  0xd3   :  { %171 = dma.done.wait [#allocation3], 256  }
  0xd4   :  { %172 = vsyncadd [#allocation3], 4294967040 }
  0xd5   :  { %127 = vsyncpa [#allocation3], 1 }

// kernel: decoder_rnn_forward.4
= control target key start
LH: loop header
LB: loop body
LE: loop exit
PB: predicated region body
PF: predicated region fallthrough
CT: control target
= control target key end

     0   :  { %vm15_vm0 = vcmask 261120   ;;  %v1196_v0 = vmov 0.0   ;;  %vm1197_vm1 = vmmov 0   ;;  %s1198_s18 = smov 64   ;;  %s1199_s19 = smov 32   ;;  %s1448_s1 = inlined_call_operand.vmem [shape: f32[32,128], index: 1, kind: input, shape index: {}]   ;;  %s1449_s0 = inlined_call_operand.vmem [shape: f32[8,8,128], index: 0, kind: input, shape index: {}]   ;;  %s1450_s2 = inlined_call_operand.vmem [shape: f32[8,8,32], index: 2, kind: output, shape index: {}]  }
   0x1   :  { %1039 = vmatprep.subr.mxu0 %v1196_v0  ;;  %v1220_v1 = vld [vmem:[%s1448_s1 + $0x18] sm:$0xff]  ;;  %v1225_v2 = vld [vmem:[%s1448_s1 + $0x10] sm:$0xff]  ;;  %1047 = vmatprep.mubr.msk.f32.mxu0 %vm1197_vm1, %v1196_v0  ;;  %16 = vst.msk [vmem:[#allocation2] sm:$0xff] %vm15_vm0, %v1196_v0  ;;  %17 = vst.msk [vmem:[#allocation3] sm:$0xff] %vm15_vm0, %v1196_v0  ;;  %s1200_s20 = smov 96  }
   0x2   :  { %1040 = vmatpush3.msra.mxu0 %v1220_v1  ;;  %1050 = vmatprep.subr.mxu1 %v1196_v0  ;;  %v1239_v3 = vld [vmem:[%s1448_s1 + $0x8] sm:$0xff]  ;;  %v1248_v4 = vld [vmem:[%s1448_s1] sm:$0xff]  ;;  %v975_v51 = vld [vmem:[%s1449_s0 + $0x10] sm:$0xff] }
   0x3   :  { %1041 = vmatprep.subr.mxu0 %v1196_v0  ;;  %1051 = vmatpush3.msra.mxu1 %v1220_v1  ;;  %v24_v6 = vld [vmem:[%s1449_s0] sm:$0xff]  ;;  %v971_v29 = vld [vmem:[%s1449_s0 + $0x8] sm:$0xff] }
   0x4   :  { %1042 = vmatpush3.msra.mxu0 %v1225_v2  ;;  %1052 = vmatprep.subr.mxu1 %v1196_v0 }
   0x5   :  { %1043 = vmatprep.subr.mxu0 %v1196_v0  ;;  %1053 = vmatpush3.msra.mxu1 %v1225_v2 }
   0x6   :  { %1044 = vmatpush3.msra.mxu0 %v1239_v3  ;;  %1054 = vmatprep.subr.mxu1 %v1196_v0 }
   0x7   :  { %1045 = vmatprep.subr.mxu0 %v1196_v0  ;;  %1055 = vmatpush3.msra.mxu1 %v1239_v3 }
   0x8   :  { %1046 = vmatpush3.msra.mxu0 %v1248_v4  ;;  %v22_v5 = vld [vmem:[#allocation2] sm:$0xff]  ;;  %1056 = vmatprep.subr.mxu1 %v1196_v0  ;;  %v23_v11 = vld [vmem:[#allocation3] sm:$0xff] }
   0x9   :  { %1048 = vmatmul.mubr.msk.f32.vlgmr.msra.gmra.mxu0 %vm15_vm0, %v22_v5  ;;  %1057 = vmatpush3.msra.mxu1 %v1248_v4 }
   0xa   :  { %1058 = vmatprep.mubr.msk.f32.mxu1 %vm1197_vm1, %v1196_v0  ;;  %1061 = vmatprep.subr.mxu0 %v1196_v0 }
   0xb   :  { %1062 = vmatpush3.msra.mxu0 %v1220_v1  ;;  %1069 = vmatprep.mubr.msk.f32.mxu0 %vm1197_vm1, %v1196_v0 }
   0xc   :  { %1063 = vmatprep.subr.mxu0 %v1196_v0  ;;  %1072 = vmatprep.subr.mxu1 %v1196_v0 }
   0xd   :  { %1064 = vmatpush3.msra.mxu0 %v1225_v2 }
   0xe   :  { %1065 = vmatprep.subr.mxu0 %v1196_v0 }
   0xf   :  { %1066 = vmatpush3.msra.mxu0 %v1239_v3 }
  0x10   :  { %1067 = vmatprep.subr.mxu0 %v1196_v0 }
  0x11   :  { %1068 = vmatpush3.msra.mxu0 %v1248_v4 }
  0x12   :  { %1083 = vmatprep.subr.mxu0 %v1196_v0 }
  0xc9   :  { %v95_v7 = vpop.f32.mrf.mxu0 }
  0xca   :  { %v99_v8 = vadd.f32 %v95_v7, %v24_v6 }
  0xcb   :  { %v1049_v9 = vpop.f32.mrf.mxu0 }
  0xcc   :  { %1132 = vtanh.f32 %v99_v8  ;;  %v970_v12 = vmul.f32 -1.442695, %v99_v8 }
  0xce   :  { %1134 = vpow2.f32 %v970_v12 }
  0xd9   :  { %v1133_v10 = vpop.eup %1132 }
  0xda   :  { %113 = vrot.lane.b32.xlu0 %v1133_v10, %s1198_s18 }
  0xdb   :  { %v1135_v13 = vpop.eup %1134 }
  0xdc   :  { %v103_v14 = vadd.f32 1.0, %v1135_v13 }
  0xde   :  { %108 = vrot.lane.b32.xlu0 %v23_v11, %s1199_s19  ;;  %1136 = vrcp.f32 %v103_v14  ;;  %v979_v14 = vld [vmem:[%s1449_s0 + $0x18] sm:$0xff] }
  0xeb   :  { %v1137_v15 = vpop.eup %1136 }
 0x14c   :  { %v114_v16 = vpop.permute.xlu0 %113 }
 0x14d   :  { %v116_v17 = vmul.f32 %v1137_v15, %v114_v16 }
 0x14f   :  { %118 = vrot.lane.b32.xlu1 %v116_v17, %s1199_s19 }
 0x150   :  { %v109_v18 = vpop.permute.xlu0 %108 }
 0x151   :  { %v111_v19 = vmul.f32 %v1137_v15, %v109_v18 }
 0x1c1   :  { %v119_v20 = vpop.permute.xlu1 %118 }
 0x1c2   :  { %v121_v21 = vadd.f32 %v119_v20, %v111_v19 }
 0x1c4   :  { %1138 = vtanh.f32 %v121_v21 }
 0x1d1   :  { %v1139_v22 = vpop.eup %1138 }
 0x1d2   :  { %124 = vrot.lane.b32.xlu1 %v1139_v22, %s1198_s18 }
 0x1d6   :  { %135 = vrot.lane.b32.xlu1 %v121_v21, %s1200_s20 }
 0x244   :  { %v125_v23 = vpop.permute.xlu1 %124 }
 0x245   :  { %v127_v24 = vmul.f32 %v1137_v15, %v125_v23 }
 0x247   :  { %129 = vrot.lane.b32.xlu0 %v127_v24, %s1199_s19 }
 0x248   :  { %v136_v25 = vpop.permute.xlu1 %135 }
 0x249   :  { %138 = vst.msk [vmem:[#allocation3] sm:$0xff] %vm15_vm0, %v136_v25 }
 0x250   :  { %v140_v26 = vld [vmem:[#allocation3] sm:$0xff] }
 0x251   :  { %225 = vrot.lane.b32.xlu1 %v140_v26, %s1199_s19 }
 0x2b9   :  { %v130_v27 = vpop.permute.xlu0 %129 }
 0x2ba   :  { %132 = vst.msk [vmem:[%s1450_s2] sm:$0xff] %vm15_vm0, %v130_v27  ;;  %133 = vst.msk [vmem:[#allocation2] sm:$0xff] %vm15_vm0, %v130_v27 }
 0x2c1   :  { %v139_v28 = vld [vmem:[#allocation2] sm:$0xff] }
 0x2c2   :  { %1059 = vmatmul.mubr.msk.f32.vlgmr.msra.gmra.mxu1 %vm15_vm0, %v139_v28 }
 0x2c3   :  { %1073 = vmatpush3.msra.mxu1 %v1220_v1  ;;  %1080 = vmatprep.mubr.msk.f32.mxu1 %vm1197_vm1, %v1196_v0  ;;  %v226_v40 = vpop.permute.xlu1 %225 }
 0x2c4   :  { %1074 = vmatprep.subr.mxu1 %v1196_v0 }
 0x2c5   :  { %1075 = vmatpush3.msra.mxu1 %v1225_v2 }
 0x2c6   :  { %1076 = vmatprep.subr.mxu1 %v1196_v0 }
 0x2c7   :  { %1077 = vmatpush3.msra.mxu1 %v1239_v3 }
 0x2c8   :  { %1078 = vmatprep.subr.mxu1 %v1196_v0 }
 0x2c9   :  { %1079 = vmatpush3.msra.mxu1 %v1248_v4 }
 0x2ca   :  { %1094 = vmatprep.subr.mxu1 %v1196_v0 }
 0x382   :  { %v212_v30 = vpop.f32.mrf.mxu1 }
 0x383   :  { %v216_v31 = vadd.f32 %v971_v29, %v212_v30 }
 0x384   :  { %v1060_v32 = vpop.f32.mrf.mxu1 }
 0x385   :  { %1140 = vtanh.f32 %v216_v31  ;;  %v973_v34 = vmul.f32 -1.442695, %v216_v31 }
 0x387   :  { %1142 = vpow2.f32 %v973_v34 }
 0x392   :  { %v1141_v33 = vpop.eup %1140 }
 0x393   :  { %230 = vrot.lane.b32.xlu0 %v1141_v33, %s1198_s18 }
 0x394   :  { %v1143_v35 = vpop.eup %1142 }
 0x395   :  { %v220_v36 = vadd.f32 1.0, %v1143_v35 }
 0x397   :  { %1144 = vrcp.f32 %v220_v36  ;;  %v983_v36 = vld [vmem:[%s1449_s0 + $0x20] sm:$0xff] }
 0x3a4   :  { %v1145_v37 = vpop.eup %1144 }
 0x3a5   :  { %v228_v41 = vmul.f32 %v1145_v37, %v226_v40 }
 0x405   :  { %v231_v38 = vpop.permute.xlu0 %230 }
 0x406   :  { %v233_v39 = vmul.f32 %v1145_v37, %v231_v38 }
 0x408   :  { %235 = vrot.lane.b32.xlu0 %v233_v39, %s1199_s19 }
 0x47a   :  { %v236_v42 = vpop.permute.xlu0 %235 }
 0x47b   :  { %v238_v43 = vadd.f32 %v236_v42, %v228_v41 }
 0x47d   :  { %1146 = vtanh.f32 %v238_v43 }
 0x48a   :  { %v1147_v44 = vpop.eup %1146 }
 0x48b   :  { %241 = vrot.lane.b32.xlu1 %v1147_v44, %s1198_s18 }
 0x48f   :  { %253 = vrot.lane.b32.xlu1 %v238_v43, %s1200_s20 }
 0x4fd   :  { %v242_v45 = vpop.permute.xlu1 %241 }
 0x4fe   :  { %v244_v46 = vmul.f32 %v1145_v37, %v242_v45 }
 0x500   :  { %246 = vrot.lane.b32.xlu0 %v244_v46, %s1199_s19 }
 0x501   :  { %v254_v47 = vpop.permute.xlu1 %253 }
 0x502   :  { %256 = vst.msk [vmem:[#allocation3] sm:$0xff] %vm15_vm0, %v254_v47 }
 0x509   :  { %v258_v48 = vld [vmem:[#allocation3] sm:$0xff] }
 0x50a   :  { %343 = vrot.lane.b32.xlu1 %v258_v48, %s1199_s19 }
 0x572   :  { %v247_v49 = vpop.permute.xlu0 %246 }
 0x573   :  { %974 = vst.msk [vmem:[%s1450_s2 + $0x8] sm:$0xff] %vm15_vm0, %v247_v49  ;;  %251 = vst.msk [vmem:[#allocation2] sm:$0xff] %vm15_vm0, %v247_v49 }
 0x57a   :  { %v257_v50 = vld [vmem:[#allocation2] sm:$0xff] }
 0x57b   :  { %1070 = vmatmul.mubr.msk.f32.vlgmr.msra.gmra.mxu0 %vm15_vm0, %v257_v50 }
 0x57c   :  { %1084 = vmatpush3.msra.mxu0 %v1220_v1  ;;  %1091 = vmatprep.mubr.msk.f32.mxu0 %vm1197_vm1, %v1196_v0  ;;  %v344_v62 = vpop.permute.xlu1 %343 }
 0x57d   :  { %1085 = vmatprep.subr.mxu0 %v1196_v0 }
 0x57e   :  { %1086 = vmatpush3.msra.mxu0 %v1225_v2 }
 0x57f   :  { %1087 = vmatprep.subr.mxu0 %v1196_v0 }
 0x580   :  { %1088 = vmatpush3.msra.mxu0 %v1239_v3 }
 0x581   :  { %1089 = vmatprep.subr.mxu0 %v1196_v0 }
 0x582   :  { %1090 = vmatpush3.msra.mxu0 %v1248_v4 }
 0x583   :  { %1105 = vmatprep.subr.mxu0 %v1196_v0 }
 0x63b   :  { %v330_v52 = vpop.f32.mrf.mxu0 }
 0x63c   :  { %v334_v53 = vadd.f32 %v975_v51, %v330_v52 }
 0x63d   :  { %v1071_v54 = vpop.f32.mrf.mxu0 }
 0x63e   :  { %1148 = vtanh.f32 %v334_v53  ;;  %v977_v56 = vmul.f32 -1.442695, %v334_v53 }
 0x640   :  { %1150 = vpow2.f32 %v977_v56 }
 0x64b   :  { %v1149_v55 = vpop.eup %1148 }
 0x64c   :  { %348 = vrot.lane.b32.xlu0 %v1149_v55, %s1198_s18 }
 0x64d   :  { %v1151_v57 = vpop.eup %1150 }
 0x64e   :  { %v338_v58 = vadd.f32 1.0, %v1151_v57 }
 0x650   :  { %1152 = vrcp.f32 %v338_v58  ;;  %v987_v58 = vld [vmem:[%s1449_s0 + $0x28] sm:$0xff] }
 0x65d   :  { %v1153_v59 = vpop.eup %1152 }
 0x65e   :  { %v346_v63 = vmul.f32 %v1153_v59, %v344_v62 }
 0x6be   :  { %v349_v60 = vpop.permute.xlu0 %348 }
 0x6bf   :  { %v351_v61 = vmul.f32 %v1153_v59, %v349_v60 }
 0x6c1   :  { %353 = vrot.lane.b32.xlu0 %v351_v61, %s1199_s19 }
 0x733   :  { %v354_v5 = vpop.permute.xlu0 %353 }
 0x734   :  { %v356_v6 = vadd.f32 %v354_v5, %v346_v63 }
 0x736   :  { %1154 = vtanh.f32 %v356_v6 }
 0x743   :  { %v1155_v7 = vpop.eup %1154 }
 0x744   :  { %359 = vrot.lane.b32.xlu1 %v1155_v7, %s1198_s18 }
 0x748   :  { %371 = vrot.lane.b32.xlu1 %v356_v6, %s1200_s20 }
 0x7b6   :  { %v360_v8 = vpop.permute.xlu1 %359 }
 0x7b7   :  { %v362_v9 = vmul.f32 %v1153_v59, %v360_v8 }
 0x7b9   :  { %364 = vrot.lane.b32.xlu0 %v362_v9, %s1199_s19 }
 0x7ba   :  { %v372_v10 = vpop.permute.xlu1 %371 }
 0x7bb   :  { %374 = vst.msk [vmem:[#allocation3] sm:$0xff] %vm15_vm0, %v372_v10 }
 0x7c2   :  { %v376_v11 = vld [vmem:[#allocation3] sm:$0xff] }
 0x7c3   :  { %461 = vrot.lane.b32.xlu1 %v376_v11, %s1199_s19 }
 0x82b   :  { %v365_v12 = vpop.permute.xlu0 %364 }
 0x82c   :  { %978 = vst.msk [vmem:[%s1450_s2 + $0x10] sm:$0xff] %vm15_vm0, %v365_v12  ;;  %369 = vst.msk [vmem:[#allocation2] sm:$0xff] %vm15_vm0, %v365_v12 }
 0x833   :  { %v375_v13 = vld [vmem:[#allocation2] sm:$0xff] }
 0x834   :  { %1081 = vmatmul.mubr.msk.f32.vlgmr.msra.gmra.mxu1 %vm15_vm0, %v375_v13 }
 0x835   :  { %1095 = vmatpush3.msra.mxu1 %v1220_v1  ;;  %1102 = vmatprep.mubr.msk.f32.mxu1 %vm1197_vm1, %v1196_v0  ;;  %v462_v25 = vpop.permute.xlu1 %461 }
 0x836   :  { %1096 = vmatprep.subr.mxu1 %v1196_v0 }
 0x837   :  { %1097 = vmatpush3.msra.mxu1 %v1225_v2 }
 0x838   :  { %1098 = vmatprep.subr.mxu1 %v1196_v0 }
 0x839   :  { %1099 = vmatpush3.msra.mxu1 %v1239_v3 }
 0x83a   :  { %1100 = vmatprep.subr.mxu1 %v1196_v0 }
 0x83b   :  { %1101 = vmatpush3.msra.mxu1 %v1248_v4 }
 0x83c   :  { %1116 = vmatprep.subr.mxu1 %v1196_v0 }
 0x8f4   :  { %v448_v15 = vpop.f32.mrf.mxu1 }
 0x8f5   :  { %v452_v16 = vadd.f32 %v979_v14, %v448_v15 }
 0x8f6   :  { %v1082_v17 = vpop.f32.mrf.mxu1 }
 0x8f7   :  { %1156 = vtanh.f32 %v452_v16  ;;  %v981_v19 = vmul.f32 -1.442695, %v452_v16  ;;  %v991_v16 = vld [vmem:[%s1449_s0 + $0x30] sm:$0xff] }
 0x8f9   :  { %1158 = vpow2.f32 %v981_v19 }
 0x904   :  { %v1157_v18 = vpop.eup %1156 }
 0x905   :  { %466 = vrot.lane.b32.xlu0 %v1157_v18, %s1198_s18 }
 0x906   :  { %v1159_v20 = vpop.eup %1158 }
 0x907   :  { %v456_v21 = vadd.f32 1.0, %v1159_v20 }
 0x909   :  { %1160 = vrcp.f32 %v456_v21 }
 0x916   :  { %v1161_v22 = vpop.eup %1160 }
 0x917   :  { %v464_v26 = vmul.f32 %v1161_v22, %v462_v25 }
 0x977   :  { %v467_v23 = vpop.permute.xlu0 %466 }
 0x978   :  { %v469_v24 = vmul.f32 %v1161_v22, %v467_v23 }
 0x97a   :  { %471 = vrot.lane.b32.xlu0 %v469_v24, %s1199_s19 }
 0x9ec   :  { %v472_v27 = vpop.permute.xlu0 %471 }
 0x9ed   :  { %v474_v28 = vadd.f32 %v472_v27, %v464_v26 }
 0x9ef   :  { %1162 = vtanh.f32 %v474_v28 }
 0x9fc   :  { %v1163_v29 = vpop.eup %1162 }
 0x9fd   :  { %477 = vrot.lane.b32.xlu1 %v1163_v29, %s1198_s18 }
 0xa01   :  { %489 = vrot.lane.b32.xlu1 %v474_v28, %s1200_s20 }
 0xa6f   :  { %v478_v30 = vpop.permute.xlu1 %477 }
 0xa70   :  { %v480_v31 = vmul.f32 %v1161_v22, %v478_v30 }
 0xa72   :  { %482 = vrot.lane.b32.xlu0 %v480_v31, %s1199_s19 }
 0xa73   :  { %v490_v32 = vpop.permute.xlu1 %489 }
 0xa74   :  { %492 = vst.msk [vmem:[#allocation3] sm:$0xff] %vm15_vm0, %v490_v32 }
 0xa7b   :  { %v494_v33 = vld [vmem:[#allocation3] sm:$0xff] }
 0xa7c   :  { %579 = vrot.lane.b32.xlu1 %v494_v33, %s1199_s19 }
 0xae4   :  { %v483_v34 = vpop.permute.xlu0 %482 }
 0xae5   :  { %982 = vst.msk [vmem:[%s1450_s2 + $0x18] sm:$0xff] %vm15_vm0, %v483_v34  ;;  %487 = vst.msk [vmem:[#allocation2] sm:$0xff] %vm15_vm0, %v483_v34 }
 0xaec   :  { %v493_v35 = vld [vmem:[#allocation2] sm:$0xff] }
 0xaed   :  { %1092 = vmatmul.mubr.msk.f32.vlgmr.msra.gmra.mxu0 %vm15_vm0, %v493_v35 }
 0xaee   :  { %1106 = vmatpush3.msra.mxu0 %v1220_v1  ;;  %1113 = vmatprep.mubr.msk.f32.mxu0 %vm1197_vm1, %v1196_v0  ;;  %v580_v47 = vpop.permute.xlu1 %579 }
 0xaef   :  { %1107 = vmatprep.subr.mxu0 %v1196_v0 }
 0xaf0   :  { %1108 = vmatpush3.msra.mxu0 %v1225_v2 }
 0xaf1   :  { %1109 = vmatprep.subr.mxu0 %v1196_v0 }
 0xaf2   :  { %1110 = vmatpush3.msra.mxu0 %v1239_v3 }
 0xaf3   :  { %1111 = vmatprep.subr.mxu0 %v1196_v0 }
 0xaf4   :  { %1112 = vmatpush3.msra.mxu0 %v1248_v4 }
 0xbad   :  { %v566_v37 = vpop.f32.mrf.mxu0 }
 0xbae   :  { %v570_v38 = vadd.f32 %v983_v36, %v566_v37 }
 0xbaf   :  { %v1093_v39 = vpop.f32.mrf.mxu0 }
 0xbb0   :  { %1164 = vtanh.f32 %v570_v38  ;;  %v985_v41 = vmul.f32 -1.442695, %v570_v38  ;;  %v995_v38 = vld [vmem:[%s1449_s0 + $0x38] sm:$0xff] }
 0xbb2   :  { %1166 = vpow2.f32 %v985_v41 }
 0xbbd   :  { %v1165_v40 = vpop.eup %1164 }
 0xbbe   :  { %584 = vrot.lane.b32.xlu0 %v1165_v40, %s1198_s18 }
 0xbbf   :  { %v1167_v42 = vpop.eup %1166 }
 0xbc0   :  { %v574_v43 = vadd.f32 1.0, %v1167_v42 }
 0xbc2   :  { %1168 = vrcp.f32 %v574_v43 }
 0xbcf   :  { %v1169_v44 = vpop.eup %1168 }
 0xbd0   :  { %v582_v48 = vmul.f32 %v1169_v44, %v580_v47 }
 0xc30   :  { %v585_v45 = vpop.permute.xlu0 %584 }
 0xc31   :  { %v587_v46 = vmul.f32 %v1169_v44, %v585_v45 }
 0xc33   :  { %589 = vrot.lane.b32.xlu0 %v587_v46, %s1199_s19 }
 0xca5   :  { %v590_v49 = vpop.permute.xlu0 %589 }
 0xca6   :  { %v592_v50 = vadd.f32 %v590_v49, %v582_v48 }
 0xca8   :  { %1170 = vtanh.f32 %v592_v50 }
 0xcb5   :  { %v1171_v51 = vpop.eup %1170 }
 0xcb6   :  { %595 = vrot.lane.b32.xlu1 %v1171_v51, %s1198_s18 }
 0xcba   :  { %607 = vrot.lane.b32.xlu1 %v592_v50, %s1200_s20 }
 0xd28   :  { %v596_v52 = vpop.permute.xlu1 %595 }
 0xd29   :  { %v598_v53 = vmul.f32 %v1169_v44, %v596_v52 }
 0xd2b   :  { %600 = vrot.lane.b32.xlu0 %v598_v53, %s1199_s19 }
 0xd2c   :  { %v608_v54 = vpop.permute.xlu1 %607 }
 0xd2d   :  { %610 = vst.msk [vmem:[#allocation3] sm:$0xff] %vm15_vm0, %v608_v54 }
 0xd34   :  { %v612_v55 = vld [vmem:[#allocation3] sm:$0xff] }
 0xd35   :  { %697 = vrot.lane.b32.xlu1 %v612_v55, %s1199_s19 }
 0xd9d   :  { %v601_v56 = vpop.permute.xlu0 %600 }
 0xd9e   :  { %986 = vst.msk [vmem:[%s1450_s2 + $0x20] sm:$0xff] %vm15_vm0, %v601_v56  ;;  %605 = vst.msk [vmem:[#allocation2] sm:$0xff] %vm15_vm0, %v601_v56 }
 0xda5   :  { %v611_v57 = vld [vmem:[#allocation2] sm:$0xff] }
 0xda6   :  { %1103 = vmatmul.mubr.msk.f32.vlgmr.msra.gmra.mxu1 %vm15_vm0, %v611_v57 }
 0xda7   :  { %1117 = vmatpush3.msra.mxu1 %v1220_v1  ;;  %1124 = vmatprep.mubr.msk.f32.mxu1 %vm1197_vm1, %v1196_v0 }
 0xda8   :  { %1118 = vmatprep.subr.mxu1 %v1196_v0 }
 0xda9   :  { %1119 = vmatpush3.msra.mxu1 %v1225_v2 }
 0xdaa   :  { %1120 = vmatprep.subr.mxu1 %v1196_v0 }
 0xdab   :  { %1121 = vmatpush3.msra.mxu1 %v1239_v3 }
 0xdac   :  { %1122 = vmatprep.subr.mxu1 %v1196_v0 }
 0xdad   :  { %1123 = vmatpush3.msra.mxu1 %v1248_v4  ;;  %v698_v4 = vpop.permute.xlu1 %697 }
 0xe66   :  { %v684_v1 = vpop.f32.mrf.mxu1 }
 0xe67   :  { %v688_v59 = vadd.f32 %v987_v58, %v684_v1 }
 0xe68   :  { %v1104_v60 = vpop.f32.mrf.mxu1 }
 0xe69   :  { %1172 = vtanh.f32 %v688_v59  ;;  %v989_v2 = vmul.f32 -1.442695, %v688_v59 }
 0xe6b   :  { %1174 = vpow2.f32 %v989_v2 }
 0xe76   :  { %v1173_v61 = vpop.eup %1172 }
 0xe77   :  { %702 = vrot.lane.b32.xlu0 %v1173_v61, %s1198_s18 }
 0xe78   :  { %v1175_v62 = vpop.eup %1174 }
 0xe79   :  { %v692_v63 = vadd.f32 1.0, %v1175_v62 }
 0xe7b   :  { %1176 = vrcp.f32 %v692_v63 }
 0xe88   :  { %v1177_v3 = vpop.eup %1176 }
 0xe89   :  { %v700_v6 = vmul.f32 %v1177_v3, %v698_v4 }
 0xee9   :  { %v703_v0 = vpop.permute.xlu0 %702 }
 0xeea   :  { %v705_v5 = vmul.f32 %v1177_v3, %v703_v0 }
 0xeec   :  { %707 = vrot.lane.b32.xlu0 %v705_v5, %s1199_s19 }
 0xf5e   :  { %v708_v7 = vpop.permute.xlu0 %707 }
 0xf5f   :  { %v710_v8 = vadd.f32 %v708_v7, %v700_v6 }
 0xf61   :  { %1178 = vtanh.f32 %v710_v8 }
 0xf6e   :  { %v1179_v9 = vpop.eup %1178 }
 0xf6f   :  { %713 = vrot.lane.b32.xlu1 %v1179_v9, %s1198_s18 }
 0xf73   :  { %725 = vrot.lane.b32.xlu1 %v710_v8, %s1200_s20 }
 0xfe1   :  { %v714_v10 = vpop.permute.xlu1 %713 }
 0xfe2   :  { %v716_v11 = vmul.f32 %v1177_v3, %v714_v10 }
 0xfe4   :  { %718 = vrot.lane.b32.xlu0 %v716_v11, %s1199_s19 }
 0xfe5   :  { %v726_v12 = vpop.permute.xlu1 %725 }
 0xfe6   :  { %728 = vst.msk [vmem:[#allocation3] sm:$0xff] %vm15_vm0, %v726_v12 }
 0xfed   :  { %v730_v13 = vld [vmem:[#allocation3] sm:$0xff] }
 0xfee   :  { %815 = vrot.lane.b32.xlu1 %v730_v13, %s1199_s19 }
0x1056   :  { %v719_v14 = vpop.permute.xlu0 %718 }
0x1057   :  { %990 = vst.msk [vmem:[%s1450_s2 + $0x28] sm:$0xff] %vm15_vm0, %v719_v14  ;;  %723 = vst.msk [vmem:[#allocation2] sm:$0xff] %vm15_vm0, %v719_v14 }
0x105e   :  { %v729_v15 = vld [vmem:[#allocation2] sm:$0xff] }
0x105f   :  { %1114 = vmatmul.mubr.msk.f32.vlgmr.msra.gmra.mxu0 %vm15_vm0, %v729_v15 }
0x1060   :  { %v816_v27 = vpop.permute.xlu1 %815 }
0x111f   :  { %v802_v17 = vpop.f32.mrf.mxu0 }
0x1120   :  { %v806_v18 = vadd.f32 %v991_v16, %v802_v17 }
0x1121   :  { %v1115_v19 = vpop.f32.mrf.mxu0 }
0x1122   :  { %1180 = vtanh.f32 %v806_v18  ;;  %v993_v21 = vmul.f32 -1.442695, %v806_v18 }
0x1124   :  { %1182 = vpow2.f32 %v993_v21 }
0x112f   :  { %v1181_v20 = vpop.eup %1180 }
0x1130   :  { %820 = vrot.lane.b32.xlu0 %v1181_v20, %s1198_s18 }
0x1131   :  { %v1183_v22 = vpop.eup %1182 }
0x1132   :  { %v810_v23 = vadd.f32 1.0, %v1183_v22 }
0x1134   :  { %1184 = vrcp.f32 %v810_v23 }
0x1141   :  { %v1185_v24 = vpop.eup %1184 }
0x1142   :  { %v818_v28 = vmul.f32 %v1185_v24, %v816_v27 }
0x11a2   :  { %v821_v25 = vpop.permute.xlu0 %820 }
0x11a3   :  { %v823_v26 = vmul.f32 %v1185_v24, %v821_v25 }
0x11a5   :  { %825 = vrot.lane.b32.xlu0 %v823_v26, %s1199_s19 }
0x1217   :  { %v826_v29 = vpop.permute.xlu0 %825 }
0x1218   :  { %v828_v30 = vadd.f32 %v826_v29, %v818_v28 }
0x121a   :  { %1186 = vtanh.f32 %v828_v30 }
0x1227   :  { %v1187_v31 = vpop.eup %1186 }
0x1228   :  { %831 = vrot.lane.b32.xlu1 %v1187_v31, %s1198_s18 }
0x122c   :  { %843 = vrot.lane.b32.xlu1 %v828_v30, %s1200_s20 }
0x129a   :  { %v832_v32 = vpop.permute.xlu1 %831 }
0x129b   :  { %v834_v33 = vmul.f32 %v1185_v24, %v832_v32 }
0x129d   :  { %836 = vrot.lane.b32.xlu0 %v834_v33, %s1199_s19 }
0x129e   :  { %v844_v34 = vpop.permute.xlu1 %843 }
0x129f   :  { %846 = vst.msk [vmem:[#allocation3] sm:$0xff] %vm15_vm0, %v844_v34 }
0x12a6   :  { %v848_v35 = vld [vmem:[#allocation3] sm:$0xff] }
0x12a7   :  { %933 = vrot.lane.b32.xlu1 %v848_v35, %s1199_s19 }
0x130f   :  { %v837_v36 = vpop.permute.xlu0 %836 }
0x1310   :  { %994 = vst.msk [vmem:[%s1450_s2 + $0x30] sm:$0xff] %vm15_vm0, %v837_v36  ;;  %841 = vst.msk [vmem:[#allocation2] sm:$0xff] %vm15_vm0, %v837_v36 }
0x1317   :  { %v847_v37 = vld [vmem:[#allocation2] sm:$0xff] }
0x1318   :  { %1125 = vmatmul.mubr.msk.f32.vlgmr.msra.gmra.mxu1 %vm15_vm0, %v847_v37 }
0x1319   :  { %v934_v49 = vpop.permute.xlu1 %933 }
0x13d8   :  { %v920_v39 = vpop.f32.mrf.mxu1 }
0x13d9   :  { %v924_v40 = vadd.f32 %v995_v38, %v920_v39 }
0x13da   :  { %v1126_v41 = vpop.f32.mrf.mxu1 }
0x13db   :  { %1188 = vtanh.f32 %v924_v40  ;;  %v997_v43 = vmul.f32 -1.442695, %v924_v40 }
0x13dd   :  { %1190 = vpow2.f32 %v997_v43 }
0x13e8   :  { %v1189_v42 = vpop.eup %1188 }
0x13e9   :  { %938 = vrot.lane.b32.xlu0 %v1189_v42, %s1198_s18 }
0x13ea   :  { %v1191_v44 = vpop.eup %1190 }
0x13eb   :  { %v928_v45 = vadd.f32 1.0, %v1191_v44 }
0x13ed   :  { %1192 = vrcp.f32 %v928_v45 }
0x13fa   :  { %v1193_v46 = vpop.eup %1192 }
0x13fb   :  { %v936_v50 = vmul.f32 %v1193_v46, %v934_v49 }
0x145b   :  { %v939_v47 = vpop.permute.xlu0 %938 }
0x145c   :  { %v941_v48 = vmul.f32 %v1193_v46, %v939_v47 }
0x145e   :  { %943 = vrot.lane.b32.xlu0 %v941_v48, %s1199_s19 }
0x14d0   :  { %v944_v51 = vpop.permute.xlu0 %943 }
0x14d1   :  { %v946_v52 = vadd.f32 %v944_v51, %v936_v50 }
0x14d3   :  { %1194 = vtanh.f32 %v946_v52 }
0x14e0   :  { %v1195_v53 = vpop.eup %1194 }
0x14e1   :  { %949 = vrot.lane.b32.xlu1 %v1195_v53, %s1198_s18 }
0x14e5   :  { %961 = vrot.lane.b32.xlu1 %v946_v52, %s1200_s20 }
0x1553   :  { %v950_v54 = vpop.permute.xlu1 %949 }
0x1554   :  { %v952_v55 = vmul.f32 %v1193_v46, %v950_v54 }
0x1556   :  { %954 = vrot.lane.b32.xlu0 %v952_v55, %s1199_s19 }
0x1557   :  { %v962_v56 = vpop.permute.xlu1 %961 }
0x1558   :  { %964 = vst.msk [vmem:[#allocation3] sm:$0xff] %vm15_vm0, %v962_v56 }
0x15c8   :  { %v955_v57 = vpop.permute.xlu0 %954 }
0x15c9   :  { %998 = vst.msk [vmem:[%s1450_s2 + $0x38] sm:$0xff] %vm15_vm0, %v955_v57  ;;  %959 = vst.msk [vmem:[#allocation2] sm:$0xff] %vm15_vm0, %v955_v57 }

</bundles_post_ra>
